<compile_context>
chip_gen: v7x
topology: tpu7x:2x2x1
jax: 0.10.0
libtpu: 0.0.40
codegen_flags: <defaults>
</compile_context>

<pallas_src>
import functools

import jax
import jax.numpy as jnp
import numpy as np
from jax.experimental import pallas as pl
from jax.experimental.pallas import tpu as pltpu


# ---------------------------------------------------------------------------
# Pallas kernels
# ---------------------------------------------------------------------------
def _conv_bn_relu_kernel(x_ref, w_ref, shift_ref, o_ref, *,
                         KH, KW, stride, dilation, TOH, OW, C, relu):
    """Fused im2col conv + (bias/BN folded) shift + optional ReLU.

    x_ref:     (1, 1, TIH, Wp, C)  halo-inclusive input row band (compute dtype)
    w_ref:     (KH*KW*C, TOC)      weight slab, BN scale pre-folded (compute dtype)
    shift_ref: (1, TOC)            per-channel shift, float32
    o_ref:     (1, TOH, OW, TOC)   float32 output tile, lane-dense (TOC = 128)
    """
    x = x_ref[0, 0]                                          # (TIH, Wp, C)
    s, d = stride, dilation
    taps = []
    for kh in range(KH):
        for kw in range(KW):
            taps.append(x[kh * d: kh * d + s * (TOH - 1) + 1: s,
                          kw * d: kw * d + s * (OW - 1) + 1: s, :])
    # im2col built entirely in VMEM: (TOH, OW, KH*KW*C) -> (TOH*OW, KH*KW*C)
    patches = jnp.concatenate(taps, axis=-1).reshape(TOH * OW, KH * KW * C)
    acc = jnp.dot(patches, w_ref[...], preferred_element_type=jnp.float32)
    y = acc + shift_ref[...]
    if relu:
        y = jnp.maximum(y, 0.0)
    o_ref[0] = y.reshape(TOH, OW, -1).astype(o_ref.dtype)


def _upsample_kernel(wk_ref, x_ref, o_ref):
    """Bilinear (align_corners=True) upsample of one NHWC image as a single
    lane-dense matmul: out[(u,v), c] = sum_{(h,w)} kron(Wr,Wc)[(u,v),(h,w)] * x[(h,w), c]."""
    o = jnp.dot(wk_ref[...], x_ref[0], preferred_element_type=jnp.float32)
    o_ref[0] = o.astype(o_ref.dtype)


# ---------------------------------------------------------------------------
# Host-side helpers
# ---------------------------------------------------------------------------
def _linear_interp_matrix(out_size, in_size):
    """Row-stochastic [out_size, in_size] matrix for align_corners=True bilinear."""
    i = np.arange(out_size, dtype=np.float64)
    if out_size > 1:
        src = i * (in_size - 1) / (out_size - 1)
    else:
        src = np.zeros_like(i)
    lo = np.clip(np.floor(src).astype(np.int64), 0, in_size - 1)
    hi = np.clip(lo + 1, 0, in_size - 1)
    frac = src - lo
    W = np.zeros((out_size, in_size), dtype=np.float32)
    W[np.arange(out_size), lo] += (1.0 - frac).astype(np.float32)
    W[np.arange(out_size), hi] += frac.astype(np.float32)
    return W


def _round_up(x, m):
    return ((x + m - 1) // m) * m


class BasicConv:
    """JAX/Pallas re-implementation of models/FSSD_vgg.py::BasicConv (inference)."""

    LANES = 128          # output-channel tile (lane-dense stores)
    TARGET_ROWS = 512    # ~rows of the im2col matmul per grid step

    def __init__(self, in_planes, out_planes, kernel_size, stride=1, padding=0,
                 dilation=1, groups=1, relu=True, bn=False, bias=True, up_size=0,
                 key=None, compute_dtype=jnp.bfloat16):
        assert groups == 1  # TODO(synk): grouped conv (groups > 1) not implemented
        self.in_planes = in_planes
        self.out_channels = out_planes
        self.kernel_size = kernel_size
        self.stride = stride
        self.padding = padding
        self.dilation = dilation
        self.relu = relu
        self.bn = bn
        self.up_size = up_size
        self.compute_dtype = compute_dtype

        key = jax.random.PRNGKey(0) if key is None else key
        k1, k2, k3, k4 = jax.random.split(key, 4)
        fan_in = in_planes * kernel_size * kernel_size
        bound = 1.0 / np.sqrt(fan_in)
        # Conv2d default init: U(-1/sqrt(fan_in), 1/sqrt(fan_in))
        self.weight = jax.random.uniform(
            k1, (out_planes, in_planes, kernel_size, kernel_size),
            jnp.float32, -bound, bound)
        self.bias = (jax.random.uniform(k2, (out_planes,), jnp.float32, -bound, bound)
                     if bias else None)
        if bn:
            # BatchNorm applied in eval-mode (running statistics), matching
            # module.eval() semantics.  Stats chosen deterministically.
            self.gamma = jax.random.uniform(k3, (out_planes,), jnp.float32, 0.5, 1.5)
            self.beta = jax.random.uniform(k4, (out_planes,), jnp.float32, -0.5, 0.5)
            self.running_mean = jnp.linspace(-0.2, 0.2, out_planes, dtype=jnp.float32)
            self.running_var = jnp.linspace(0.5, 1.5, out_planes, dtype=jnp.float32)
            self.eps = 1e-5

    # ---- fused conv + bias + BN(eval) + ReLU (NHWC internal) --------------
    def _conv_bn_relu(self, x):
        N, C, H, W = x.shape
        kH = kW = self.kernel_size
        s, p, d = self.stride, self.padding, self.dilation
        OC = self.out_channels
        OH = (H + 2 * p - d * (kH - 1) - 1) // s + 1
        OW = (W + 2 * p - d * (kW - 1) - 1) // s + 1

        # NHWC internal layout; NCHW only at the public module boundary.
        x_nhwc = jnp.transpose(x, (0, 2, 3, 1))
        xp = jnp.pad(x_nhwc, ((0, 0), (p, p), (p, p), (0, 0)))
        Wp = W + 2 * p

        # Output-row tiling: ~TARGET_ROWS im2col rows per grid step.
        TOH = max(1, min(OH, self.TARGET_ROWS // max(1, OW)))
        num_t = -(-OH // TOH)
        OHp = num_t * TOH
        TIH = (TOH - 1) * s + (kH - 1) * d + 1           # halo-inclusive band height
        rows_needed = (num_t - 1) * TOH * s + TIH
        if rows_needed > H + 2 * p:                      # zero-pad for the row tail
            xp = jnp.pad(xp, ((0, 0), (0, rows_needed - (H + 2 * p)), (0, 0), (0, 0)))

        # Overlapping halo row-bands (~(KH-1)/TOH extra traffic, not 9x im2col).
        if num_t == 1:
            bands = xp[:, None, :TIH]
        else:
            bands = jnp.stack(
                [xp[:, t * TOH * s: t * TOH * s + TIH] for t in range(num_t)], axis=1)
        bands = bands.astype(self.compute_dtype)         # (N, num_t, TIH, Wp, C)

        # Weight as [KH*KW*C, OC] (tap-major, matching the in-kernel concat),
        # with the BN scale folded in; zero-pad OC to a lane multiple.
        Kfull = kH * kW * C
        w_mat = jnp.transpose(self.weight, (2, 3, 1, 0)).reshape(Kfull, OC)
        b = self.bias if self.bias is not None else jnp.zeros((OC,), jnp.float32)
        if self.bn:
            scale = self.gamma / jnp.sqrt(self.running_var + self.eps)
            shift = (b - self.running_mean) * scale + self.beta
        else:
            scale = jnp.ones((OC,), jnp.float32)
            shift = b
        w_fold = w_mat * scale[None, :]
        OCp = _round_up(OC, self.LANES)
        w_pad = jnp.pad(w_fold, ((0, 0), (0, OCp - OC))).astype(self.compute_dtype)
        shift_pad = jnp.pad(shift, (0, OCp - OC)).reshape(1, OCp)

        # TODO(synk): for very large K (=C*KH*KW) on v7x, add a K-reduction grid
        # axis with an fp32 VMEM accumulator instead of holding the full weight.
        TOC = self.LANES
        num_j = OCp // TOC
        kernel = functools.partial(
            _conv_bn_relu_kernel, KH=kH, KW=kW, stride=s, dilation=d,
            TOH=TOH, OW=OW, C=C, relu=self.relu)

        out = pl.pallas_call(
            kernel,
            out_shape=jax.ShapeDtypeStruct((N, OHp, OW, OCp), jnp.float32),
            grid_spec=pltpu.PrefetchScalarGridSpec(
                num_scalar_prefetch=0,
                grid=(N, num_t, num_j),
                in_specs=[
                    pl.BlockSpec((1, 1, TIH, Wp, C), lambda n, t, j: (n, t, 0, 0, 0)),
                    pl.BlockSpec((Kfull, TOC), lambda n, t, j: (0, j)),
                    pl.BlockSpec((1, TOC), lambda n, t, j: (0, j)),
                ],
                out_specs=pl.BlockSpec((1, TOH, OW, TOC),
                                       lambda n, t, j: (n, t, 0, j)),
            ),
            compiler_params=pltpu.CompilerParams(
                dimension_semantics=("parallel", "parallel", "parallel"),
                vmem_limit_bytes=32 * 1024 * 1024),
        )(bands, w_pad, shift_pad)

        return out[:, :OH]               # NHWC; channels still padded to OCp

    # ---- bilinear upsample (align_corners=True), lane-dense ---------------
    def _upsample(self, y_nhwc):
        N, H, W, OCp = y_nhwc.shape
        U = self.up_size
        Wr = _linear_interp_matrix(U, H)
        Wc = _linear_interp_matrix(U, W)
        wk = jnp.asarray(np.kron(Wr, Wc)).astype(self.compute_dtype)   # (U*U, H*W)
        x_flat = y_nhwc.reshape(N, H * W, OCp).astype(self.compute_dtype)

        out = pl.pallas_call(
            _upsample_kernel,
            out_shape=jax.ShapeDtypeStruct((N, U * U, OCp), jnp.float32),
            grid_spec=pltpu.PrefetchScalarGridSpec(
                num_scalar_prefetch=0,
                grid=(N,),
                in_specs=[
                    pl.BlockSpec((U * U, H * W), lambda n: (0, 0)),
                    pl.BlockSpec((1, H * W, OCp), lambda n: (n, 0, 0)),
                ],
                out_specs=pl.BlockSpec((1, U * U, OCp), lambda n: (n, 0, 0)),
            ),
            compiler_params=pltpu.CompilerParams(
                dimension_semantics=("parallel",),
                vmem_limit_bytes=32 * 1024 * 1024),
        )(wk, x_flat)
        return out.reshape(N, U, U, OCp)

    def __call__(self, x):
        y = self._conv_bn_relu(x)            # (N, OH, OW, OCp), NHWC, padded OC
        if self.up_size > 0:
            y = self._upsample(y)            # (N, U, U, OCp)
        # Un-pad channels and convert to NCHW only at the module boundary.
        return jnp.transpose(y[..., :self.out_channels], (0, 3, 1, 2))

    # ---- pure-JAX reference for validation ---------------------------------
    def reference(self, x):
        y = jax.lax.conv_general_dilated(
            x, self.weight,
            window_strides=(self.stride, self.stride),
            padding=[(self.padding, self.padding)] * 2,
            rhs_dilation=(self.dilation, self.dilation),
            dimension_numbers=('NCHW', 'OIHW', 'NCHW'))
        if self.bias is not None:
            y = y + self.bias.reshape(1, -1, 1, 1)
        if self.bn:
            inv = self.gamma / jnp.sqrt(self.running_var + self.eps)
            y = (y - self.running_mean.reshape(1, -1, 1, 1)) * inv.reshape(1, -1, 1, 1) \
                + self.beta.reshape(1, -1, 1, 1)
        if self.relu:
            y = jnp.maximum(y, 0.0)
        if self.up_size > 0:
            U = self.up_size
            Wr = jnp.asarray(_linear_interp_matrix(U, y.shape[2]))
            Wc = jnp.asarray(_linear_interp_matrix(U, y.shape[3]))
            y = jnp.einsum('uh,nchw,vw->ncuv', Wr, y, Wc)
        return y


if __name__ == "__main__":
    key = jax.random.PRNGKey(0)
    kx, kp1, kp2 = jax.random.split(key, 3)
    x = jax.random.normal(kx, (2, 4, 16, 16), jnp.float32)

    # Tolerances: fp32 configs compare MXU (default-precision) matmuls against
    # XLA's conv lowering; bf16 config additionally carries the bf16 operand cast.

    # config 1: conv + bias + ReLU, fp32 compute path.
    m1 = BasicConv(4, 8, kernel_size=3, stride=1, padding=1,
                   relu=True, bn=False, bias=True, up_size=0, key=kp1,
                   compute_dtype=jnp.float32)
    y1 = jax.block_until_ready(m1(x))
    np.testing.assert_allclose(np.asarray(y1), np.asarray(m1.reference(x)),
                               rtol=1e-2, atol=1e-2)

    # config 2: conv + eval-mode BN + ReLU + bilinear upsample, fp32 path.
    m2 = BasicConv(4, 8, kernel_size=3, stride=1, padding=1,
                   relu=True, bn=True, bias=True, up_size=32, key=kp2,
                   compute_dtype=jnp.float32)
    y2 = jax.block_until_ready(m2(x))
    np.testing.assert_allclose(np.asarray(y2), np.asarray(m2.reference(x)),
                               rtol=1e-2, atol=1e-2)

    # config 3: same as config 2 but bf16 operands / fp32 accumulation (perf path).
    m3 = BasicConv(4, 8, kernel_size=3, stride=1, padding=1,
                   relu=True, bn=True, bias=True, up_size=32, key=kp2,
                   compute_dtype=jnp.bfloat16)
    y3 = jax.block_until_ready(m3(x))
    np.testing.assert_allclose(np.asarray(y3), np.asarray(m3.reference(x)),
                               rtol=5e-2, atol=5e-2)

    print("KERNEL_OK")
</pallas_src>

<mosaic_0001>
module attributes {stable_mosaic.version = 11 : i64} {
  func.func @_conv_bn_relu_kernel(%arg0: i32, %arg1: i32, %arg2: i32, %arg3: memref<1x1x18x18x4xf32, #tpu.memory_space<vmem>>, %arg4: memref<36x128xf32, #tpu.memory_space<vmem>>, %arg5: memref<1x128xf32, #tpu.memory_space<vmem>>, %arg6: memref<1x16x16x128xf32, #tpu.memory_space<vmem>>) attributes {dimension_semantics = [#tpu.dimension_semantics<parallel>, #tpu.dimension_semantics<parallel>, #tpu.dimension_semantics<parallel>], iteration_bounds = array<i64: 2, 1, 1>, scalar_prefetch = 0 : i64, scratch_operands = 0 : i64, tpu.core_type = #tpu.core_type<tc>, window_params = [{transform_indices = @transform_0, window_bounds = array<i64: 1, 1, 18, 18, 4>}, {transform_indices = @transform_1, window_bounds = array<i64: 36, 128>}, {transform_indices = @transform_2, window_bounds = array<i64: 1, 128>}, {transform_indices = @transform_3, window_bounds = array<i64: 1, 16, 16, 128>}]} {
    %c0 = arith.constant 0 : index
    %c0_0 = arith.constant 0 : index
    %c0_1 = arith.constant 0 : index
    %c0_2 = arith.constant 0 : index
    %c0_3 = arith.constant 0 : index
    %0 = vector.load %arg3[%c0, %c0_0, %c0_1, %c0_2, %c0_3] : memref<1x1x18x18x4xf32, #tpu.memory_space<vmem>>, vector<1x1x18x18x4xf32>
    %1 = vector.shape_cast %0 : vector<1x1x18x18x4xf32> to vector<18x18x4xf32>
    %2 = vector.extract_strided_slice %1 {offsets = [0, 0, 0], sizes = [16, 16, 4], strides = [1, 1, 1]} : vector<18x18x4xf32> to vector<16x16x4xf32>
    %3 = vector.extract_strided_slice %1 {offsets = [0, 1, 0], sizes = [16, 16, 4], strides = [1, 1, 1]} : vector<18x18x4xf32> to vector<16x16x4xf32>
    %4 = vector.extract_strided_slice %1 {offsets = [0, 2, 0], sizes = [16, 16, 4], strides = [1, 1, 1]} : vector<18x18x4xf32> to vector<16x16x4xf32>
    %5 = vector.extract_strided_slice %1 {offsets = [1, 0, 0], sizes = [16, 16, 4], strides = [1, 1, 1]} : vector<18x18x4xf32> to vector<16x16x4xf32>
    %6 = vector.extract_strided_slice %1 {offsets = [1, 1, 0], sizes = [16, 16, 4], strides = [1, 1, 1]} : vector<18x18x4xf32> to vector<16x16x4xf32>
    %7 = vector.extract_strided_slice %1 {offsets = [1, 2, 0], sizes = [16, 16, 4], strides = [1, 1, 1]} : vector<18x18x4xf32> to vector<16x16x4xf32>
    %8 = vector.extract_strided_slice %1 {offsets = [2, 0, 0], sizes = [16, 16, 4], strides = [1, 1, 1]} : vector<18x18x4xf32> to vector<16x16x4xf32>
    %9 = vector.extract_strided_slice %1 {offsets = [2, 1, 0], sizes = [16, 16, 4], strides = [1, 1, 1]} : vector<18x18x4xf32> to vector<16x16x4xf32>
    %10 = vector.extract_strided_slice %1 {offsets = [2, 2, 0], sizes = [16, 16, 4], strides = [1, 1, 1]} : vector<18x18x4xf32> to vector<16x16x4xf32>
    %11 = tpu.concatenate %2, %3, %4, %5, %6, %7, %8, %9, %10 in 2 : vector<16x16x4xf32>, vector<16x16x4xf32>, vector<16x16x4xf32>, vector<16x16x4xf32>, vector<16x16x4xf32>, vector<16x16x4xf32>, vector<16x16x4xf32>, vector<16x16x4xf32>, vector<16x16x4xf32> -> vector<16x16x36xf32>
    %12 = vector.shape_cast %11 : vector<16x16x36xf32> to vector<256x36xf32>
    %c0_4 = arith.constant 0 : index
    %c0_5 = arith.constant 0 : index
    %13 = vector.load %arg4[%c0_4, %c0_5] : memref<36x128xf32, #tpu.memory_space<vmem>>, vector<36x128xf32>
    %cst = arith.constant dense<0.000000e+00> : vector<256x128xf32>
    %14 = tpu.matmul %12, %13, %cst {dimension_numbers = #tpu.dot_dimension_numbers<[1], [0], [0], [1], [0, 0, 1, 1], [], []>} : vector<256x36xf32>, vector<36x128xf32>, vector<256x128xf32> -> vector<256x128xf32>
    %c0_6 = arith.constant 0 : index
    %c0_7 = arith.constant 0 : index
    %15 = vector.load %arg5[%c0_6, %c0_7] : memref<1x128xf32, #tpu.memory_space<vmem>>, vector<1x128xf32>
    %16 = vector.broadcast %15 : vector<1x128xf32> to vector<256x128xf32>
    %17 = arith.addf %14, %16 : vector<256x128xf32>
    %cst_8 = arith.constant 0.000000e+00 : f32
    %18 = vector.broadcast %cst_8 : f32 to vector<256x128xf32>
    %19 = arith.maximumf %17, %18 : vector<256x128xf32>
    %20 = vector.shape_cast %19 : vector<256x128xf32> to vector<16x16x128xf32>
    %c0_9 = arith.constant 0 : index
    %c0_10 = arith.constant 0 : index
    %c0_11 = arith.constant 0 : index
    %c0_12 = arith.constant 0 : index
    %21 = vector.load %arg6[%c0_9, %c0_10, %c0_11, %c0_12] : memref<1x16x16x128xf32, #tpu.memory_space<vmem>>, vector<1x16x16x128xf32>
    %22 = vector.shape_cast %21 : vector<1x16x16x128xf32> to vector<16x16x128xf32>
    %23 = vector.shape_cast %20 : vector<16x16x128xf32> to vector<1x16x16x128xf32>
    tpu.vector_store %arg6[%c0_9, %c0_10, %c0_11, %c0_12], %23 {strides = array<i32>} : memref<1x16x16x128xf32, #tpu.memory_space<vmem>>, vector<1x16x16x128xf32>,
    return
  }
  func.func @transform_0(%arg0: i32, %arg1: i32, %arg2: i32) -> (i32, i32, i32, i32, i32) {
    %c0_i32 = arith.constant 0 : i32
    %c0_i32_0 = arith.constant 0 : i32
    %c0_i32_1 = arith.constant 0 : i32
    %c0_i32_2 = arith.constant 0 : i32
    return %arg0, %arg1, %c0_i32, %c0_i32_0, %c0_i32_1 : i32, i32, i32, i32, i32
  }
  func.func @transform_1(%arg0: i32, %arg1: i32, %arg2: i32) -> (i32, i32) {
    %c0_i32 = arith.constant 0 : i32
    %c0_i32_0 = arith.constant 0 : i32
    return %c0_i32, %arg2 : i32, i32
  }
  func.func @transform_2(%arg0: i32, %arg1: i32, %arg2: i32) -> (i32, i32) {
    %c0_i32 = arith.constant 0 : i32
    %c0_i32_0 = arith.constant 0 : i32
    return %c0_i32, %arg2 : i32, i32
  }
  func.func @transform_3(%arg0: i32, %arg1: i32, %arg2: i32) -> (i32, i32, i32, i32) {
    %c0_i32 = arith.constant 0 : i32
    %c0_i32_0 = arith.constant 0 : i32
    return %arg0, %arg1, %c0_i32, %arg2 : i32, i32, i32, i32
  }
}

</mosaic_0001>

<bundles_post_ra>
// kernel: tpu_custom_call.1
= control target key start
LH: loop header
LB: loop body
LE: loop exit
PB: predicated region body
PF: predicated region fallthrough
CT: control target
= control target key end

     0   :  { %8 = vsyncpa [#allocation3], 0  ;;  %s4309_s0 = inlined_call_operand.vmem [shape: f32[2,1,18,18,4], index: 0, kind: input, shape index: {}]   ;;  %s4310_s1 = inlined_call_operand.vmem [shape: f32[36,128], index: 1, kind: input, shape index: {}]   ;;  %s4311_s2 = inlined_call_operand.vmem [shape: f32[1,128], index: 2, kind: input, shape index: {}]   ;;  %s4312_s3 = inlined_call_operand.hbm [shape: f32[2,16,16,128], index: 3, kind: output, shape index: {}]  }
   0x1   :  { %10 = vsyncpa [#allocation3 + $0x1], 0  ;;  %s2444_s12 = smov 0   ;;  %s2446_s13 = smov 0  }
   0x2   :  { %s2448_s14 = smov 0   ;;  %s2450_s15 = smov 0  }
   0x3   :  { %s2452_s16 = smov 0   ;;  %s2454_s17 = smov 0  }
   0x4 LB: > { %s2093_s18 = sadd.s32 4294967295, %s2412_s17   ;;  %s2094_s19 = sadd.s32 4294967294, %s2412_s17   ;;  %s2412_s17 = sphi %s2454_s17, %s16_s17   ;;  %s2408_s16 = sphi %s2452_s16, %s4565_s16   ;;  %s2404_s15 = sphi %s2450_s15, %s4564_s15   ;;  %s2400_s14 = sphi %s2448_s14, %s4563_s14   ;;  %s2396_s13 = sphi %s2446_s13, %s4562_s13   ;;  %s2392_s12 = sphi %s2444_s12, %s4561_s12  }
   0x5   : > { %s35_s20 = sadd.s32 1, %s2408_s16  ;;  %s126_s21 = sadd.s32 1, %s2400_s14 }
   0x6   : > { %p37_p0 = scmp.ge.s32.totalorder %s35_s20, 2  ;;  %p136_p1 = scmp.ne.s32.totalorder %s2400_s14, %s2396_s13 }
   0x7   : > { %p137_p2 = scmp.eq.s32.totalorder %s2093_s18, 1  ;;  %p142_p3 = scmp.ne.s32.totalorder %s2396_s13, %s2392_s12 }
   0x8   : > { %s4567_s20 = smov (%p37_p0, %s35_s20), 0  ;;  %p143_p5 = scmp.eq.s32.totalorder %s2094_s19, 1 }
   0x9   : > { %p2484_p4 = por %p137_p2, %p136_p1  ;;  %s119_s23 = ssub.s32 %s2408_s16, %s4567_s20 }
   0xa   : > { %p2099_p6 = scmp.ge.s32.totalorder %s2412_s17, 1  ;;  %p124_p7 = scmp.eq.s32.totalorder %s119_s23, 0 }
   0xb   : > { %p2491_p8 = por %p143_p5, %p142_p3  ;;  %p186_p9 = scmp.lt.s32.totalorder %s2412_s17, 3 }
   0xc   : > { %s2497_s25 = scalar_select %p124_p7, %s2400_s14, %s126_s21  }
   0xd   : > { %p187_p10 = pnand %p2099_p6, %p186_p9 }
   0xf   : > { %190 = sbr.rel (%p187_p10) target bundleno = 890 (0x37a), region = 32 }
  0x16   : > { %p221_p11 = scmp.lt.s32.totalorder %s2404_s15, 1  ;;  %vm340_vm0 = vcmask 1046528   ;;  %s2414_s4 = smov 4   ;;  %vm517_vm1 = vcmask 1045504   ;;  %vm1296_vm2 = vcmask 31744   ;;  %vm1329_vm3 = vcmask 64512  }
  0x17   : > { %s2415_s5 = smov 8   ;;  %s2416_s6 = smov 12   ;;  %vm1669_vm4 = vcmask 1043456   ;;  %vm1362_vm5 = vcmask 97280   ;;  %vm1395_vm6 = vcmask 130048   ;;  %vm1428_vm7 = vcmask 162816  }
  0x18   : > { %s222_s26 = scalar_select %p221_p11, %s2404_s15, 1  ;;  %vm1461_vm8 = vcmask 195584   ;;  %vm1494_vm9 = vcmask 228352   ;;  %vm1527_vm10 = vcmask 261120   ;;  %vm1572_vm11 = vcmask 293888  }
  0x19   : > { %s2417_s7 = smov 16   ;;  %s2418_s8 = smov 20  }
  0x1a   : > { %s2251_s27 = smul.u32 432, %s222_s26  ;;  %s2419_s9 = smov 24  }
  0x1b   : > { %s2420_s21 = smov 28   ;;  %s2141_s11 = sshll.u32 %s2404_s15, 12 }
  0x1c   : > { %s2504_s30 = scalar_lea.vmem %s4309_s0, %s2251_s27  ;;  %s4252_s23 = scalar_lea.hbm %s4312_s3, %s2141_s11 }
  0x1d   : > { %v2507_v0 = vld [vmem:[%s2504_s30 + $0x18] sm:$0xff]  ;;  %v2510_v1 = vld [vmem:[%s2504_s30 + $0x20] sm:$0xff]  ;;  %v2518_v5 = vld [vmem:[%s2504_s30 + $0x8] sm:$0xff]  ;;  %s2422_s27 = smov [#allocation2]  }
  0x1e   : > { %v2513_v2 = vld [vmem:[%s2504_s30] sm:$0xff]  ;;  %v346_v3 = vrot.slane %v2507_v0, 1  ;;  %v347_v4 = vrot.slane %v2510_v1, 1  ;;  %v2522_v7 = vld [vmem:[%s2504_s30 + $0x28] sm:$0x3]  ;;  %v342_v8 = vrot.slane %v2518_v5, 1 }
  0x1f   : > { %v341_v6 = vrot.slane %v2513_v2, 1  ;;  %v349_v9 = vrot.slane %v2522_v7, 1  ;;  %v2527_v10 = vld [vmem:[%s2504_s30 + $0x10] sm:$0x3]  ;;  %v2530_v11 = vld [vmem:[%s2504_s30 + $0x38] sm:$0xff]  ;;  %v2560_v24 = vld [vmem:[%s2504_s30 + $0x48] sm:$0xff] }
  0x20   : > { %v2533_v12 = vsel %vm340_vm0, %v346_v3, %v347_v4  ;;  %v344_v13 = vrot.slane %v2527_v10, 1  ;;  %v2537_v14 = vld [vmem:[%s2504_s30 + $0x40] sm:$0x3]  ;;  %v2540_v15 = vld [vmem:[%s2504_s30 + $0x30] sm:$0xff]  ;;  %v352_v18 = vrot.slane %v2530_v11, 1  ;;  %v356_v29 = vrot.slane %v2560_v24, 1 }
  0x21   : > { %425 = vrot.lane.b32.xlu1 %v2533_v12, %s2414_s4  ;;  %v343_v16 = vsel %vm340_vm0, %v341_v6, %v342_v8  ;;  %v2547_v17 = vsel %vm340_vm0, %v347_v4, %v349_v9  ;;  %v354_v19 = vrot.slane %v2537_v14, 1  ;;  %v351_v21 = vrot.slane %v2540_v15, 1  ;;  %v2554_v22 = vld [vmem:[%s2504_s30 + $0x50] sm:$0xff]  ;;  %v2557_v23 = vld [vmem:[%s2504_s30 + $0x58] sm:$0x3]  ;;  %v2575_v30 = vld [vmem:[%s2504_s30 + $0x68] sm:$0xff] }
  0x22   : > { %421 = vrot.lane.b32.xlu0 %v343_v16, %s2414_s4  ;;  %v345_v20 = vsel %vm340_vm0, %v342_v8, %v344_v13  ;;  %v357_v26 = vrot.slane %v2554_v22, 1  ;;  %v359_v27 = vrot.slane %v2557_v23, 1  ;;  %v2578_v31 = vld [vmem:[%s2504_s30 + $0x70] sm:$0x3]  ;;  %v2581_v32 = vld [vmem:[%s2504_s30 + $0x60] sm:$0xff]  ;;  %v362_v34 = vrot.slane %v2575_v30, 1 }
  0x23   : > { %v2566_v25 = vsel %vm340_vm0, %v352_v18, %v354_v19  ;;  %v2571_v28 = vsel %vm340_vm0, %v351_v21, %v352_v18  ;;  %v364_v35 = vrot.slane %v2578_v31, 1  ;;  %v361_v37 = vrot.slane %v2581_v32, 1  ;;  %v2597_v38 = vld [vmem:[%s2504_s30 + $0x80] sm:$0xff]  ;;  %v2600_v39 = vld [vmem:[%s2504_s30 + $0x88] sm:$0x3]  ;;  %v2603_v40 = vld [vmem:[%s2504_s30 + $0x78] sm:$0xff] }
  0x24   : > { %v2588_v33 = vsel %vm340_vm0, %v357_v26, %v359_v27  ;;  %v2593_v36 = vsel %vm340_vm0, %v356_v29, %v357_v26  ;;  %v367_v42 = vrot.slane %v2597_v38, 1  ;;  %v369_v43 = vrot.slane %v2600_v39, 1  ;;  %v2619_v46 = vld [vmem:[%s2504_s30 + $0x98] sm:$0xff]  ;;  %v2622_v47 = vld [vmem:[%s2504_s30 + $0xa0] sm:$0x3]  ;;  %v2625_v48 = vld [vmem:[%s2504_s30 + $0x90] sm:$0xff] }
  0x25   : > { %427 = vrot.lane.b32.xlu1 %v2547_v17, %s2414_s4  ;;  %4415 = vst [vmem:[#allocation5_spill] sm:$0xff] %v2588_v33  ;;  %4416 = vst [vmem:[#allocation6_spill] sm:$0xff] %v2593_v36  ;;  %v2610_v41 = vsel %vm340_vm0, %v362_v34, %v364_v35  ;;  %v2615_v44 = vsel %vm340_vm0, %v361_v37, %v362_v34  ;;  %v366_v45 = vrot.slane %v2603_v40, 1  ;;  %v372_v50 = vrot.slane %v2619_v46, 1  ;;  %v2641_v54 = vld [vmem:[%s2504_s30 + $0xb0] sm:$0xff]  ;;  %v2647_v56 = vld [vmem:[%s2504_s30 + $0xa8] sm:$0xff] }
  0x26   : > { %423 = vrot.lane.b32.xlu0 %v345_v20, %s2414_s4  ;;  %4417 = vst [vmem:[#allocation7_spill] sm:$0xff] %v2610_v41  ;;  %4418 = vst [vmem:[#allocation8_spill] sm:$0xff] %v2615_v44  ;;  %v2632_v49 = vsel %vm340_vm0, %v367_v42, %v369_v43  ;;  %v374_v51 = vrot.slane %v2622_v47, 1  ;;  %v371_v53 = vrot.slane %v2625_v48, 1  ;;  %v2644_v55 = vld [vmem:[%s2504_s30 + $0xb8] sm:$0x3] }
  0x27   : > { %4419 = vst [vmem:[#allocation9_spill] sm:$0xff] %v2632_v49  ;;  %v2637_v52 = vsel %vm340_vm0, %v366_v45, %v367_v42  ;;  %v377_v58 = vrot.slane %v2641_v54, 1  ;;  %v379_v59 = vrot.slane %v2644_v55, 1  ;;  %v376_v61 = vrot.slane %v2647_v56, 1  ;;  %v2663_v62 = vld [vmem:[%s2504_s30 + $0xc8] sm:$0xff]  ;;  %v2669_v3 = vld [vmem:[%s2504_s30 + $0xc0] sm:$0xff] }
  0x28   : > { %4420 = vst [vmem:[#allocation10_spill] sm:$0xff] %v2637_v52  ;;  %v2654_v57 = vsel %vm340_vm0, %v372_v50, %v374_v51  ;;  %v2659_v60 = vsel %vm340_vm0, %v371_v53, %v372_v50  ;;  %v2666_v63 = vld [vmem:[%s2504_s30 + $0xd0] sm:$0x3]  ;;  %v382_v6 = vrot.slane %v2663_v62, 1  ;;  %v381_v13 = vrot.slane %v2669_v3, 1  ;;  %v2685_v16 = vld [vmem:[%s2504_s30 + $0xe0] sm:$0xff] }
  0x29   : > { %431 = vrot.lane.b32.xlu1 %v2566_v25, %s2414_s4  ;;  %4421 = vst [vmem:[#allocation11_spill] sm:$0xff] %v2654_v57  ;;  %4422 = vst [vmem:[#allocation12_spill] sm:$0xff] %v2659_v60  ;;  %v2676_v4 = vsel %vm340_vm0, %v377_v58, %v379_v59  ;;  %v384_v8 = vrot.slane %v2666_v63, 1  ;;  %v2681_v9 = vsel %vm340_vm0, %v376_v61, %v377_v58  ;;  %v2688_v18 = vld [vmem:[%s2504_s30 + $0xe8] sm:$0x3]  ;;  %v2691_v19 = vld [vmem:[%s2504_s30 + $0xd8] sm:$0xff] }
  0x2a   : > { %429 = vrot.lane.b32.xlu0 %v2571_v28, %s2414_s4  ;;  %4423 = vst [vmem:[#allocation13_spill] sm:$0xff] %v2676_v4  ;;  %4424 = vst [vmem:[#allocation14_spill] sm:$0xff] %v2681_v9  ;;  %v387_v21 = vrot.slane %v2685_v16, 1  ;;  %v389_v26 = vrot.slane %v2688_v18, 1  ;;  %v2703_v27 = vsel %vm340_vm0, %v381_v13, %v382_v6  ;;  %v386_v29 = vrot.slane %v2691_v19, 1  ;;  %v2707_v34 = vld [vmem:[%s2504_s30 + $0xf8] sm:$0xff] }
  0x2b   : > { %v2698_v20 = vsel %vm340_vm0, %v382_v6, %v384_v8  ;;  %4426 = vst [vmem:[#allocation16_spill] sm:$0xff] %v2703_v27  ;;  %v2710_v35 = vld [vmem:[%s2504_s30 + $0x100] sm:$0x3]  ;;  %v2713_v37 = vld [vmem:[%s2504_s30 + $0xf0] sm:$0xff]  ;;  %v392_v43 = vrot.slane %v2707_v34, 1  ;;  %v2735_v59 = vld [vmem:[%s2504_s30 + $0x108] sm:$0xff] }
  0x2c   : > { %4425 = vst [vmem:[#allocation15_spill] sm:$0xff] %v2698_v20  ;;  %v2720_v42 = vsel %vm340_vm0, %v387_v21, %v389_v26  ;;  %v394_v45 = vrot.slane %v2710_v35, 1  ;;  %v2725_v50 = vsel %vm340_vm0, %v386_v29, %v387_v21  ;;  %v391_v51 = vrot.slane %v2713_v37, 1  ;;  %v2729_v53 = vld [vmem:[%s2504_s30 + $0x110] sm:$0xff]  ;;  %v2732_v58 = vld [vmem:[%s2504_s30 + $0x118] sm:$0x3] }
  0x2d   : > { %435 = vrot.lane.b32.xlu1 %v2588_v33, %s2414_s4  ;;  %4427 = vst [vmem:[#allocation17_spill] sm:$0xff] %v2720_v42  ;;  %v397_v6 = vrot.slane %v2729_v53, 1  ;;  %v399_v8 = vrot.slane %v2732_v58, 1  ;;  %v396_v21 = vrot.slane %v2735_v59, 1  ;;  %v2751_v26 = vld [vmem:[%s2504_s30 + $0x128] sm:$0xff]  ;;  %v2801_v33 = vld [vmem:[%s2504_s30 + $0x150] sm:$0xff] }
  0x2e   : > { %433 = vrot.lane.b32.xlu0 %v2593_v36, %s2414_s4  ;;  %v2742_v61 = vsel %vm340_vm0, %v392_v43, %v394_v45  ;;  %v2747_v13 = vsel %vm340_vm0, %v391_v51, %v392_v43  ;;  %v2754_v29 = vld [vmem:[%s2504_s30 + $0x130] sm:$0x3]  ;;  %v402_v43 = vrot.slane %v2751_v26, 1  ;;  %s2338_s28 = sshll.u32 %s2422_s27, 4  ;;  %s2339_s28 = int_to_ptr.vmem [resolvable:$false] %s2338_s28 }
  0x2f   : > { %4428 = vst [vmem:[#allocation18_spill] sm:$0xff] %v2742_v61  ;;  %4429 = vst [vmem:[#allocation19_spill] sm:$0xff] %v2747_v13  ;;  %v2764_v45 = vsel %vm340_vm0, %v397_v6, %v399_v8  ;;  %v404_v51 = vrot.slane %v2754_v29, 1  ;;  %s2340_s29 = scalar_lea.vmem %s2339_s28, 8192 }
  0x30   : > { %4430 = vst [vmem:[#allocation20_spill] sm:$0xff] %v2764_v45 }
  0x31   : > { %439 = vrot.lane.b32.xlu1 %v2610_v41, %s2414_s4  ;;  %v2786_v8 = vsel %vm340_vm0, %v402_v43, %v404_v51  ;;  %v2795_v41 = vld [vmem:[%s2504_s30 + $0x158] sm:$0xff] }
  0x32   : > { %437 = vrot.lane.b32.xlu0 %v2615_v44, %s2414_s4  ;;  %4432 = vst [vmem:[#allocation22_spill] sm:$0xff] %v2786_v8  ;;  %v2798_v44 = vld [vmem:[%s2504_s30 + $0x160] sm:$0x3] }
  0x35   : > { %443 = vrot.lane.b32.xlu1 %v2632_v49, %s2414_s4 }
  0x36   : > { %441 = vrot.lane.b32.xlu0 %v2637_v52, %s2414_s4 }
  0x39   : > { %447 = vrot.lane.b32.xlu1 %v2654_v57, %s2414_s4  ;;  %v2776_v57 = vld [vmem:[%s2504_s30 + $0x148] sm:$0x3] }
  0x3a   : > { %445 = vrot.lane.b32.xlu0 %v2659_v60, %s2414_s4  ;;  %v2779_v60 = vld [vmem:[%s2504_s30 + $0x138] sm:$0xff] }
  0x3b   : > { %v406_v52 = vrot.slane %v2779_v60, 1 }
  0x3d   : > { %451 = vrot.lane.b32.xlu1 %v2676_v4, %s2414_s4 }
  0x3e   : > { %449 = vrot.lane.b32.xlu0 %v2681_v9, %s2414_s4  ;;  %v2773_v9 = vld [vmem:[%s2504_s30 + $0x140] sm:$0xff] }
  0x41   : > { %455 = vrot.lane.b32.xlu1 %v2698_v20, %s2414_s4  ;;  %v2757_v20 = vld [vmem:[%s2504_s30 + $0x120] sm:$0xff] }
  0x42   : > { %453 = vrot.lane.b32.xlu0 %v2703_v27, %s2414_s4  ;;  %v2769_v27 = vsel %vm340_vm0, %v396_v21, %v397_v6  ;;  %v401_v4 = vrot.slane %v2757_v20, 1  ;;  %v407_v6 = vrot.slane %v2773_v9, 1  ;;  %v409_v21 = vrot.slane %v2776_v57, 1 }
  0x43   : > { %4431 = vst [vmem:[#allocation21_spill] sm:$0xff] %v2769_v27 }
  0x44   : > { %v2791_v49 = vsel %vm340_vm0, %v401_v4, %v402_v43  ;;  %v2808_v51 = vsel %vm340_vm0, %v407_v6, %v409_v21  ;;  %v412_v4 = vrot.slane %v2795_v41, 1  ;;  %v414_v43 = vrot.slane %v2798_v44, 1 }
  0x45   : > { %459 = vrot.lane.b32.xlu1 %v2720_v42, %s2414_s4  ;;  %4433 = vst [vmem:[#allocation23_spill] sm:$0xff] %v2791_v49  ;;  %4434 = vst [vmem:[#allocation24_spill] sm:$0xff] %v2808_v51 }
  0x46   : > { %457 = vrot.lane.b32.xlu0 %v2725_v50, %s2414_s4  ;;  %v2830_v21 = vsel %vm340_vm0, %v412_v4, %v414_v43  ;;  %v519_v43 = vrot.slane %v2518_v5, 2  ;;  %v526_v5 = vrot.slane %v2522_v7, 2  ;;  %v528_v7 = vrot.slane %v2540_v15, 2 }
  0x47   : > { %4438 = vst [vmem:[#allocation28_spill] sm:$0xff] %v2830_v21 }
  0x49   : > { %463 = vrot.lane.b32.xlu1 %v2742_v61, %s2414_s4  ;;  %v2817_v61 = vld [vmem:[%s2504_s30 + $0x170] sm:$0xff] }
  0x4a   : > { %461 = vrot.lane.b32.xlu0 %v2747_v13, %s2414_s4  ;;  %4436 = vst [vmem:[#allocation26_spill] sm:$0xff] %v2817_v61  ;;  %v2820_v13 = vld [vmem:[%s2504_s30 + $0x178] sm:$0x3] }
  0x4d   : > { %467 = vrot.lane.b32.xlu1 %v2764_v45, %s2414_s4  ;;  %v2813_v45 = vsel %vm340_vm0, %v406_v52, %v407_v6  ;;  %v417_v52 = vrot.slane %v2817_v61, 1  ;;  %v419_v6 = vrot.slane %v2820_v13, 1 }
  0x4e   : > { %465 = vrot.lane.b32.xlu0 %v2769_v27, %s2414_s4  ;;  %4435 = vst [vmem:[#allocation25_spill] sm:$0xff] %v2813_v45  ;;  %v411_v27 = vrot.slane %v2801_v33, 1 }
  0x51   : > { %471 = vrot.lane.b32.xlu1 %v2786_v8, %s2414_s4  ;;  %v2823_v8 = vld [vmem:[%s2504_s30 + $0x168] sm:$0xff] }
  0x52   : > { %469 = vrot.lane.b32.xlu0 %v2791_v49, %s2414_s4  ;;  %4437 = vst [vmem:[#allocation27_spill] sm:$0xff] %v2823_v8  ;;  %v2835_v49 = vsel %vm340_vm0, %v411_v27, %v412_v4  ;;  %v416_v42 = vrot.slane %v2823_v8, 1  ;;  %v518_v27 = vrot.slane %v2513_v2, 2 }
  0x53   : > { %4439 = vst [vmem:[#allocation29_spill] sm:$0xff] %v2835_v49 }
  0x54   : > { %v2848_v36 = vsel %vm340_vm0, %v416_v42, %v417_v52  ;;  %v523_v42 = vrot.slane %v2507_v0, 2 }
  0x55   : > { %475 = vrot.lane.b32.xlu1 %v2808_v51, %s2414_s4  ;;  %v2843_v51 = vsel %vm340_vm0, %v417_v52, %v419_v6  ;;  %4441 = vst [vmem:[#allocation31_spill] sm:$0xff] %v2848_v36  ;;  %v524_v6 = vrot.slane %v2510_v1, 2  ;;  %v529_v52 = vrot.slane %v2530_v11, 2 }
  0x56   : > { %473 = vrot.lane.b32.xlu0 %v2813_v45, %s2414_s4  ;;  %4440 = vst [vmem:[#allocation30_spill] sm:$0xff] %v2843_v51  ;;  %v521_v45 = vrot.slane %v2527_v10, 2  ;;  %v520_v10 = vsel %vm517_vm1, %v518_v27, %v519_v43  ;;  %v534_v27 = vrot.slane %v2554_v22, 2 }
  0x57   : > { %v2863_v2 = vsel %vm517_vm1, %v524_v6, %v526_v5 }
  0x58   : > { %v522_v4 = vsel %vm517_vm1, %v519_v43, %v521_v45  ;;  %v531_v45 = vrot.slane %v2537_v14, 2  ;;  %v2881_v14 = vsel %vm517_vm1, %v528_v7, %v529_v52  ;;  %v544_v7 = vrot.slane %v2597_v38, 2 }
  0x59   : > { %479 = vrot.lane.b32.xlu1 %v2830_v21, %s2414_s4  ;;  %v556_v21 = vrot.slane %v2644_v55, 2 }
  0x5a   : > { %477 = vrot.lane.b32.xlu0 %v2835_v49, %s2414_s4  ;;  %v2876_v43 = vsel %vm517_vm1, %v529_v52, %v531_v45  ;;  %v538_v52 = vrot.slane %v2581_v32, 2  ;;  %v561_v49 = vrot.slane %v2666_v63, 2 }
  0x5b   : > { %4442 = vst [vmem:[#allocation32_spill] sm:$0xff] %v2876_v43 }
  0x5d   : > { %483 = vrot.lane.b32.xlu1 %v2843_v51, %s2414_s4  ;;  %v2868_v51 = vsel %vm517_vm1, %v523_v42, %v524_v6  ;;  %v533_v6 = vrot.slane %v2560_v24, 2  ;;  %v541_v42 = vrot.slane %v2578_v31, 2 }
  0x5e   : > { %481 = vrot.lane.b32.xlu0 %v2848_v36, %s2414_s4  ;;  %v551_v36 = vrot.slane %v2622_v47, 2 }
  0x61   : > { %600 = vrot.lane.b32.xlu1 %v522_v4, %s2415_s5  ;;  %v536_v4 = vrot.slane %v2557_v23, 2  ;;  %v2894_v23 = vsel %vm517_vm1, %v533_v6, %v534_v27 }
  0x62   : > { %598 = vrot.lane.b32.xlu0 %v520_v10, %s2415_s5  ;;  %v539_v10 = vrot.slane %v2575_v30, 2  ;;  %4444 = vst [vmem:[#allocation34_spill] sm:$0xff] %v2894_v23 }
  0x63   : > { %v2889_v5 = vsel %vm517_vm1, %v534_v27, %v536_v4  ;;  %v546_v4 = vrot.slane %v2600_v39, 2  ;;  %v543_v27 = vrot.slane %v2603_v40, 2 }
  0x64   : > { %4443 = vst [vmem:[#allocation33_spill] sm:$0xff] %v2889_v5  ;;  %v2902_v45 = vsel %vm517_vm1, %v539_v10, %v541_v42  ;;  %v2907_v31 = vsel %vm517_vm1, %v538_v52, %v539_v10  ;;  %v549_v42 = vrot.slane %v2619_v46, 2  ;;  %v548_v10 = vrot.slane %v2625_v48, 2 }
  0x65   : > { %604 = vrot.lane.b32.xlu1 %v2863_v2, %s2415_s5  ;;  %4445 = vst [vmem:[#allocation35_spill] sm:$0xff] %v2902_v45  ;;  %4446 = vst [vmem:[#allocation36_spill] sm:$0xff] %v2907_v31  ;;  %v2915_v6 = vsel %vm517_vm1, %v544_v7, %v546_v4  ;;  %v2920_v39 = vsel %vm517_vm1, %v543_v27, %v544_v7  ;;  %v554_v4 = vrot.slane %v2641_v54, 2  ;;  %v553_v7 = vrot.slane %v2647_v56, 2 }
  0x66   : > { %602 = vrot.lane.b32.xlu0 %v2868_v51, %s2415_s5  ;;  %4447 = vst [vmem:[#allocation37_spill] sm:$0xff] %v2915_v6  ;;  %4448 = vst [vmem:[#allocation38_spill] sm:$0xff] %v2920_v39  ;;  %v2928_v52 = vsel %vm517_vm1, %v549_v42, %v551_v36  ;;  %v2933_v47 = vsel %vm517_vm1, %v548_v10, %v549_v42  ;;  %v559_v36 = vrot.slane %v2663_v62, 2  ;;  %v558_v42 = vrot.slane %v2669_v3, 2 }
  0x67   : > { %4449 = vst [vmem:[#allocation39_spill] sm:$0xff] %v2928_v52  ;;  %4450 = vst [vmem:[#allocation40_spill] sm:$0xff] %v2933_v47  ;;  %v2941_v27 = vsel %vm517_vm1, %v554_v4, %v556_v21  ;;  %v2946_v55 = vsel %vm517_vm1, %v553_v7, %v554_v4  ;;  %v564_v21 = vrot.slane %v2685_v16, 2  ;;  %v563_v4 = vrot.slane %v2691_v19, 2 }
  0x68   : > { %4451 = vst [vmem:[#allocation41_spill] sm:$0xff] %v2941_v27  ;;  %4452 = vst [vmem:[#allocation42_spill] sm:$0xff] %v2946_v55  ;;  %v2954_v10 = vsel %vm517_vm1, %v559_v36, %v561_v49  ;;  %v2959_v63 = vsel %vm517_vm1, %v558_v42, %v559_v36  ;;  %v569_v49 = vrot.slane %v2707_v34, 2  ;;  %v568_v36 = vrot.slane %v2713_v37, 2 }
  0x69   : > { %608 = vrot.lane.b32.xlu1 %v2876_v43, %s2415_s5  ;;  %4453 = vst [vmem:[#allocation43_spill] sm:$0xff] %v2954_v10  ;;  %4454 = vst [vmem:[#allocation44_spill] sm:$0xff] %v2959_v63 }
  0x6a   : > { %606 = vrot.lane.b32.xlu0 %v2881_v14, %s2415_s5 }
  0x6d   : > { %612 = vrot.lane.b32.xlu1 %v2889_v5, %s2415_s5 }
  0x6e   : > { %610 = vrot.lane.b32.xlu0 %v2894_v23, %s2415_s5 }
  0x71   : > { %616 = vrot.lane.b32.xlu1 %v2902_v45, %s2415_s5 }
  0x72   : > { %614 = vrot.lane.b32.xlu0 %v2907_v31, %s2415_s5 }
  0x75   : > { %620 = vrot.lane.b32.xlu1 %v2915_v6, %s2415_s5 }
  0x76   : > { %618 = vrot.lane.b32.xlu0 %v2920_v39, %s2415_s5 }
  0x79   : > { %624 = vrot.lane.b32.xlu1 %v2928_v52, %s2415_s5  ;;  %v566_v52 = vrot.slane %v2688_v18, 2  ;;  %v2972_v18 = vsel %vm517_vm1, %v563_v4, %v564_v21 }
  0x7a   : > { %622 = vrot.lane.b32.xlu0 %v2933_v47, %s2415_s5  ;;  %v591_v47 = vrot.slane %v2798_v44, 2  ;;  %v594_v44 = vrot.slane %v2817_v61, 2 }
  0x7b   : > { %v2967_v7 = vsel %vm517_vm1, %v564_v21, %v566_v52  ;;  %v574_v52 = vrot.slane %v2729_v53, 2  ;;  %v573_v21 = vrot.slane %v2735_v59, 2 }
  0x7d   : > { %628 = vrot.lane.b32.xlu1 %v2941_v27, %s2415_s5  ;;  %v571_v27 = vrot.slane %v2710_v35, 2  ;;  %v2985_v35 = vsel %vm517_vm1, %v568_v36, %v569_v49 }
  0x7e   : > { %626 = vrot.lane.b32.xlu0 %v2946_v55, %s2415_s5  ;;  %v586_v55 = vrot.slane %v2776_v57, 2 }
  0x7f   : > { %v2980_v42 = vsel %vm517_vm1, %v569_v49, %v571_v27  ;;  %v579_v27 = vrot.slane %v2751_v26, 2  ;;  %v578_v49 = vrot.slane %v2757_v20, 2 }
  0x80   : > { %4455 = vst [vmem:[#allocation45_spill] sm:$0xff] %v2980_v42 }
  0x81   : > { %632 = vrot.lane.b32.xlu1 %v2954_v10, %s2415_s5  ;;  %v576_v10 = vrot.slane %v2732_v58, 2  ;;  %v2998_v58 = vsel %vm517_vm1, %v573_v21, %v574_v52 }
  0x82   : > { %630 = vrot.lane.b32.xlu0 %v2959_v63, %s2415_s5  ;;  %v581_v63 = vrot.slane %v2754_v29, 2  ;;  %4457 = vst [vmem:[#allocation47_spill] sm:$0xff] %v2998_v58  ;;  %v3011_v29 = vsel %vm517_vm1, %v578_v49, %v579_v27 }
  0x83   : > { %v2993_v4 = vsel %vm517_vm1, %v574_v52, %v576_v10  ;;  %v584_v10 = vrot.slane %v2773_v9, 2  ;;  %4459 = vst [vmem:[#allocation49_spill] sm:$0xff] %v3011_v29  ;;  %v583_v52 = vrot.slane %v2779_v60, 2 }
  0x84   : > { %4456 = vst [vmem:[#allocation46_spill] sm:$0xff] %v2993_v4  ;;  %v3006_v36 = vsel %vm517_vm1, %v579_v27, %v581_v63  ;;  %v589_v63 = vrot.slane %v2795_v41, 2  ;;  %v588_v27 = vrot.slane %v2801_v33, 2 }
  0x85   : > { %636 = vrot.lane.b32.xlu1 %v2967_v7, %s2415_s5  ;;  %4458 = vst [vmem:[#allocation48_spill] sm:$0xff] %v3006_v36  ;;  %v3019_v21 = vsel %vm517_vm1, %v584_v10, %v586_v55  ;;  %v3026_v57 = vsel %vm517_vm1, %v583_v52, %v584_v10  ;;  %v593_v52 = vrot.slane %v2823_v8, 2 }
  0x86   : > { %634 = vrot.lane.b32.xlu0 %v2972_v18, %s2415_s5  ;;  %4460 = vst [vmem:[#allocation50_spill] sm:$0xff] %v3019_v21  ;;  %4462 = vst [vmem:[#allocation52_spill] sm:$0xff] %v3026_v57  ;;  %v3036_v55 = vsel %vm517_vm1, %v589_v63, %v591_v47  ;;  %v3043_v10 = vsel %vm517_vm1, %v588_v27, %v589_v63 }
  0x87   : > { %4464 = vst [vmem:[#allocation54_spill] sm:$0xff] %v3036_v55  ;;  %4466 = vst [vmem:[#allocation56_spill] sm:$0xff] %v3043_v10 }
  0x89   : > { %640 = vrot.lane.b32.xlu1 %v2980_v42, %s2415_s5 }
  0x8a   : > { %638 = vrot.lane.b32.xlu0 %v2985_v35, %s2415_s5 }
  0x8d   : > { %644 = vrot.lane.b32.xlu1 %v2993_v4, %s2415_s5 }
  0x8e   : > { %642 = vrot.lane.b32.xlu0 %v2998_v58, %s2415_s5 }
  0x91   : > { %648 = vrot.lane.b32.xlu1 %v3006_v36, %s2415_s5 }
  0x92   : > { %646 = vrot.lane.b32.xlu0 %v3011_v29, %s2415_s5 }
  0x93   : > { %v3023_v6 = vpop.permute.xlu1 %425 }
  0x94   : > { %4461 = vst [vmem:[#allocation51_spill] sm:$0xff] %v3023_v6  ;;  %v3029_v49 = vpop.permute.xlu0 %421  ;;  %v596_v6 = vrot.slane %v2820_v13, 2  ;;  %v3058_v13 = vsel %vm517_vm1, %v593_v52, %v594_v44 }
  0x95   : > { %4463 = vst [vmem:[#allocation53_spill] sm:$0xff] %v3029_v49  ;;  %652 = vrot.lane.b32.xlu1 %v3019_v21, %s2415_s5  ;;  %4469 = vst [vmem:[#allocation59_spill] sm:$0xff] %v3058_v13 }
  0x96   : > { %650 = vrot.lane.b32.xlu0 %v3026_v57, %s2415_s5  ;;  %v3053_v47 = vsel %vm517_vm1, %v594_v44, %v596_v6 }
  0x97   : > { %v3040_v39 = vpop.permute.xlu1 %427  ;;  %4468 = vst [vmem:[#allocation58_spill] sm:$0xff] %v3053_v47 }
  0x98   : > { %4465 = vst [vmem:[#allocation55_spill] sm:$0xff] %v3040_v39  ;;  %v3046_v49 = vpop.permute.xlu0 %423 }
  0x99   : > { %4467 = vst [vmem:[#allocation57_spill] sm:$0xff] %v3046_v49  ;;  %656 = vrot.lane.b32.xlu1 %v3036_v55, %s2415_s5 }
  0x9a   : > { %654 = vrot.lane.b32.xlu0 %v3043_v10, %s2415_s5 }
  0x9b   : > { %v3055_v21 = vpop.permute.xlu1 %431 }
  0x9c   : > { %v3060_v63 = vpop.permute.xlu0 %429 }
  0x9d   : > { %660 = vrot.lane.b32.xlu1 %v3053_v47, %s2415_s5 }
  0x9e   : > { %658 = vrot.lane.b32.xlu0 %v3058_v13, %s2415_s5 }
  0x9f   : > { %v3066_v27 = vpop.permute.xlu1 %435 }
  0xa0   : > { %v3068_v55 = vpop.permute.xlu0 %433 }
  0xa1   : > { %698 = vrot.lane.b32.xlu1 %v2510_v1, %s2416_s6 }
  0xa2   : > { %696 = vrot.lane.b32.xlu0 %v2507_v0, %s2416_s6 }
  0xa3   : > { %v3074_v6 = vpop.permute.xlu1 %439 }
  0xa4   : > { %v3076_v44 = vpop.permute.xlu0 %437 }
  0xa5   : > { %702 = vrot.lane.b32.xlu1 %v2530_v11, %s2416_s6 }
  0xa6   : > { %700 = vrot.lane.b32.xlu0 %v2540_v15, %s2416_s6 }
  0xa7   : > { %v3082_v52 = vpop.permute.xlu1 %443 }
  0xa8   : > { %v3084_v47 = vpop.permute.xlu0 %441 }
  0xa9   : > { %706 = vrot.lane.b32.xlu1 %v2554_v22, %s2416_s6 }
  0xaa   : > { %704 = vrot.lane.b32.xlu0 %v2560_v24, %s2416_s6 }
  0xab   : > { %v3090_v0 = vpop.permute.xlu1 %447 }
  0xac   : > { %v3092_v1 = vpop.permute.xlu0 %445 }
  0xad   : > { %710 = vrot.lane.b32.xlu1 %v2575_v30, %s2416_s6 }
  0xae   : > { %708 = vrot.lane.b32.xlu0 %v2581_v32, %s2416_s6 }
  0xaf   : > { %v3098_v13 = vpop.permute.xlu1 %451 }
  0xb0   : > { %v3100_v39 = vpop.permute.xlu0 %449 }
  0xb1   : > { %714 = vrot.lane.b32.xlu1 %v2597_v38, %s2416_s6 }
  0xb2   : > { %712 = vrot.lane.b32.xlu0 %v2603_v40, %s2416_s6 }
  0xb3   : > { %v3106_v10 = vpop.permute.xlu1 %455 }
  0xb4   : > { %4470 = vst [vmem:[#allocation60_spill] sm:$0xff] %v3106_v10  ;;  %v3108_v57 = vpop.permute.xlu0 %453 }
  0xb5   : > { %4471 = vst [vmem:[#allocation61_spill] sm:$0xff] %v3108_v57  ;;  %718 = vrot.lane.b32.xlu1 %v2619_v46, %s2416_s6 }
  0xb6   : > { %716 = vrot.lane.b32.xlu0 %v2625_v48, %s2416_s6 }
  0xb7   : > { %v3114_v49 = vpop.permute.xlu1 %459 }
  0xb8   : > { %4472 = vst [vmem:[#allocation62_spill] sm:$0xff] %v3114_v49  ;;  %v3116_v45 = vpop.permute.xlu0 %457 }
  0xb9   : > { %4473 = vst [vmem:[#allocation63_spill] sm:$0xff] %v3116_v45  ;;  %722 = vrot.lane.b32.xlu1 %v2641_v54, %s2416_s6 }
  0xba   : > { %720 = vrot.lane.b32.xlu0 %v2647_v56, %s2416_s6 }
  0xbb   : > { %v3122_v36 = vpop.permute.xlu1 %463 }
  0xbc   : > { %v3124_v10 = vpop.permute.xlu0 %461 }
  0xbd   : > { %726 = vrot.lane.b32.xlu1 %v2663_v62, %s2416_s6 }
  0xbe   : > { %724 = vrot.lane.b32.xlu0 %v2669_v3, %s2416_s6 }
  0xbf   : > { %v3130_v57 = vpop.permute.xlu1 %467 }
  0xc0   : > { %v3132_v49 = vpop.permute.xlu0 %465 }
  0xc1   : > { %730 = vrot.lane.b32.xlu1 %v2685_v16, %s2416_s6 }
  0xc2   : > { %728 = vrot.lane.b32.xlu0 %v2691_v19, %s2416_s6 }
  0xc3   : > { %v3138_v45 = vpop.permute.xlu1 %471 }
  0xc4   : > { %v3140_v31 = vpop.permute.xlu0 %469 }
  0xc5   : > { %734 = vrot.lane.b32.xlu1 %v2707_v34, %s2416_s6 }
  0xc6   : > { %732 = vrot.lane.b32.xlu0 %v2713_v37, %s2416_s6 }
  0xc7   : > { %v3146_v62 = vpop.permute.xlu1 %475 }
  0xc8   : > { %v3148_v3 = vpop.permute.xlu0 %473 }
  0xc9   : > { %738 = vrot.lane.b32.xlu1 %v2729_v53, %s2416_s6 }
  0xca   : > { %736 = vrot.lane.b32.xlu0 %v2735_v59, %s2416_s6 }
  0xcb   : > { %v3154_v16 = vpop.permute.xlu1 %479 }
  0xcc   : > { %v3156_v19 = vpop.permute.xlu0 %477 }
  0xcd   : > { %742 = vrot.lane.b32.xlu1 %v2751_v26, %s2416_s6 }
  0xce   : > { %740 = vrot.lane.b32.xlu0 %v2757_v20, %s2416_s6 }
  0xcf   : > { %v3162_v29 = vpop.permute.xlu1 %483 }
  0xd0   : > { %4474 = vst [vmem:[#allocation64_spill] sm:$0xff] %v3162_v29  ;;  %v3164_v5 = vpop.permute.xlu0 %481 }
  0xd1   : > { %4475 = vst [vmem:[#allocation65_spill] sm:$0xff] %v3164_v5  ;;  %746 = vrot.lane.b32.xlu1 %v2773_v9, %s2416_s6  ;;  %v3193_v5 = vld [vmem:[%s2504_s30 + $0x180] sm:$0xff] }
  0xd2   : > { %744 = vrot.lane.b32.xlu0 %v2779_v60, %s2416_s6 }
  0xd3   : > { %v3170_v4 = vpop.permute.xlu1 %600 }
  0xd4   : > { %4476 = vst [vmem:[#allocation66_spill] sm:$0xff] %v3170_v4  ;;  %v3172_v23 = vpop.permute.xlu0 %598  ;;  %v3187_v4 = vld [vmem:[%s2504_s30 + $0x188] sm:$0xff] }
  0xd5   : > { %4477 = vst [vmem:[#allocation67_spill] sm:$0xff] %v3172_v23  ;;  %750 = vrot.lane.b32.xlu1 %v2795_v41, %s2416_s6  ;;  %v1302_v23 = vsel %vm1296_vm2, %v2530_v11, %v3055_v21  ;;  %v1304_v21 = vsel %vm1296_vm2, %v2554_v22, %v3066_v27 }
  0xd6   : > { %748 = vrot.lane.b32.xlu0 %v2801_v33, %s2416_s6 }
  0xd7   : > { %v3178_v58 = vpop.permute.xlu1 %604 }
  0xd8   : > { %4478 = vst [vmem:[#allocation68_spill] sm:$0xff] %v3178_v58  ;;  %v3180_v42 = vpop.permute.xlu0 %602  ;;  %v1301_v58 = vsel %vm1296_vm2, %v2540_v15, %v3060_v63  ;;  %v1306_v63 = vsel %vm1296_vm2, %v2575_v30, %v3074_v6  ;;  %v1307_v6 = vsel %vm1296_vm2, %v2603_v40, %v3084_v47  ;;  %v1309_v40 = vsel %vm1296_vm2, %v2625_v48, %v3092_v1 }
  0xd9   : > { %4479 = vst [vmem:[#allocation69_spill] sm:$0xff] %v3180_v42  ;;  %754 = vrot.lane.b32.xlu1 %v2817_v61, %s2416_s6  ;;  %v1311_v48 = vsel %vm1296_vm2, %v2647_v56, %v3100_v39 }
  0xda   : > { %752 = vrot.lane.b32.xlu0 %v2823_v8, %s2416_s6 }
  0xdb   : > { %v609_v43 = vpop.permute.xlu1 %608 }
  0xdc   : > { %v3199_v42 = vsel %vm1329_vm3, %v1302_v23, %v609_v43  ;;  %v607_v61 = vpop.permute.xlu0 %606  ;;  %v1303_v43 = vsel %vm1296_vm2, %v2560_v24, %v3068_v55 }
  0xdd   : > { %v3202_v8 = vsel %vm1329_vm3, %v1301_v58, %v607_v61  ;;  %758 = vrot.lane.b32.xlu1 %v3187_v4, %s2416_s6 }
  0xde   : > { %756 = vrot.lane.b32.xlu0 %v3193_v5, %s2416_s6  ;;  %s2421_s6 = smov 32  }
  0xdf   : > { %v613_v29 = vpop.permute.xlu1 %612 }
  0xe0   : > { %v3215_v23 = vsel %vm1329_vm3, %v1304_v21, %v613_v29  ;;  %v611_v61 = vpop.permute.xlu0 %610  ;;  %v1305_v29 = vsel %vm1296_vm2, %v2581_v32, %v3076_v44 }
  0xe1   : > { %v3218_v58 = vsel %vm1329_vm3, %v1303_v43, %v611_v61  ;;  %800 = vrot.lane.b32.xlu1 %v2547_v17, %s2417_s7 }
  0xe2   : > { %798 = vrot.lane.b32.xlu0 %v2533_v12, %s2417_s7  ;;  %v1308_v12 = vsel %vm1296_vm2, %v2597_v38, %v3082_v52  ;;  %v1310_v38 = vsel %vm1296_vm2, %v2619_v46, %v3090_v0  ;;  %v1312_v46 = vsel %vm1296_vm2, %v2641_v54, %v3098_v13  ;;  %v1561_v13 = vld [vmem:[%s4310_s1 + $0x8] sm:$0xff] }
  0xe3   : > { %v617_v27 = vpop.permute.xlu1 %616 }
  0xe4   : > { %v3231_v55 = vsel %vm1329_vm3, %v1306_v63, %v617_v27  ;;  %v615_v21 = vpop.permute.xlu0 %614  ;;  %v4480_v27 = vld [vmem:[#allocation6_spill] sm:$0xff] }
  0xe5   : > { %v3234_v43 = vsel %vm1329_vm3, %v1305_v29, %v615_v21  ;;  %804 = vrot.lane.b32.xlu1 %v2566_v25, %s2417_s7 }
  0xe6   : > { %802 = vrot.lane.b32.xlu0 %v2571_v28, %s2417_s7 }
  0xe7   : > { %v621_v17 = vpop.permute.xlu1 %620 }
  0xe8   : > { %v3247_v44 = vsel %vm1329_vm3, %v1308_v12, %v621_v17  ;;  %v619_v61 = vpop.permute.xlu0 %618  ;;  %v4481_v12 = vld [vmem:[#allocation17_spill] sm:$0xff] }
  0xe9   : > { %v3250_v63 = vsel %vm1329_vm3, %v1307_v6, %v619_v61  ;;  %830 = vrot.lane.b32.xlu1 %v2725_v50, %s2417_s7  ;;  %v1318_v61 = vsel %vm1296_vm2, %v2707_v34, %v3122_v36  ;;  %v1562_v36 = vld [vmem:[%s4310_s1 + $0x10] sm:$0xff] }
  0xea   : > { %806 = vrot.lane.b32.xlu0 %v4480_v27, %s2417_s7 }
  0xeb   : > { %v625_v52 = vpop.permute.xlu1 %624 }
  0xec   : > { %v3263_v47 = vsel %vm1329_vm3, %v1310_v38, %v625_v52  ;;  %v623_v29 = vpop.permute.xlu0 %622 }
  0xed   : > { %v3266_v21 = vsel %vm1329_vm3, %v1309_v40, %v623_v29  ;;  %899 = vrot.lane.b32.xlu1 %v2868_v51, %s2418_s8 }
  0xee   : > { %832 = vrot.lane.b32.xlu0 %v4481_v12, %s2417_s7 }
  0xef   : > { %v629_v0 = vpop.permute.xlu1 %628 }
  0xf0   : > { %v3279_v1 = vsel %vm1329_vm3, %v1312_v46, %v629_v0  ;;  %v627_v17 = vpop.permute.xlu0 %626  ;;  %v1320_v46 = vsel %vm1296_vm2, %v2729_v53, %v3130_v57  ;;  %v1564_v57 = vld [vmem:[%s4310_s1 + $0x20] sm:$0xf] }
  0xf1   : > { %v3282_v6 = vsel %vm1329_vm3, %v1311_v48, %v627_v17  ;;  %901 = vrot.lane.b32.xlu1 %v2863_v2, %s2418_s8  ;;  %v1560_v2 = vld [vmem:[%s4310_s1] sm:$0xff] }
  0xf2   : > { %931 = vrot.lane.b32.xlu0 %v2972_v18, %s2418_s8 }
  0xf3   : > { %v3288_v51 = vpop.permute.xlu1 %632 }
  0xf4   : > { %v3290_v54 = vpop.permute.xlu0 %630 }
  0xf5   : > { %997 = vrot.lane.b32.xlu1 %v2540_v15, %s2419_s9  ;;  %v2237_v15 = vpack.c.bf16 %v1561_v13, %v1560_v2 }
  0xf6   : > { %933 = vrot.lane.b32.xlu0 %v2967_v7, %s2418_s8 }
  0xf7   : > { %v3296_v56 = vpop.permute.xlu1 %636  ;;  %2238 = vmatprep.subr.bf16.mxu0 %v2237_v15  ;;  %2245 = vmatprep.subr.bf16.mxu1 %v2237_v15 }
  0xf8   : > { %v3298_v39 = vpop.permute.xlu0 %634  ;;  %2240 = vmatpush3.bf16.msra.mxu0 %v2237_v15  ;;  %2248 = vmatpush3.bf16.msra.mxu1 %v2237_v15  ;;  %v1321_v15 = vsel %vm1296_vm2, %v2757_v20, %v3140_v31 }
  0xf9   : > { %999 = vrot.lane.b32.xlu1 %v2530_v11, %s2419_s9  ;;  %v1317_v11 = vsel %vm1296_vm2, %v2713_v37, %v3124_v10 }
  0xfa   : > { %1029 = vrot.lane.b32.xlu0 %v2713_v37, %s2419_s9  ;;  %v1563_v37 = vld [vmem:[%s4310_s1 + $0x18] sm:$0xff] }
  0xfb   : > { %v641_v38 = vpop.permute.xlu1 %640  ;;  %v2241_v10 = vpack.c.bf16 %v1563_v37, %v1562_v36  ;;  %v1323_v36 = vsel %vm1296_vm2, %v2779_v60, %v3148_v3  ;;  %v1325_v3 = vsel %vm1296_vm2, %v2801_v33, %v3156_v19  ;;  %v4487_v33 = vld [vmem:[#allocation27_spill] sm:$0xff] }
  0xfc   : > { %v3317_v52 = vsel %vm1329_vm3, %v1318_v61, %v641_v38  ;;  %v639_v40 = vpop.permute.xlu0 %638 }
  0xfd   : > { %v3320_v29 = vsel %vm1329_vm3, %v1317_v11, %v639_v40  ;;  %1099 = vrot.lane.b32.xlu1 %v2571_v28, %s2420_s21  ;;  %v1319_v28 = vsel %vm1296_vm2, %v2735_v59, %v3132_v49  ;;  %2242 = vmatprep.subr.bf16.mxu0 %v2241_v10  ;;  %v1322_v49 = vsel %vm1296_vm2, %v2751_v26, %v3138_v45  ;;  %v4483_v40 = vld [vmem:[#allocation18_spill] sm:$0xff] }
  0xfe   : > { %1031 = vrot.lane.b32.xlu0 %v2707_v34, %s2419_s9  ;;  %2246 = vmatprep.subr.bf16.mxu1 %v2241_v10  ;;  %v4482_v34 = vld [vmem:[#allocation19_spill] sm:$0xff]  ;;  %v1324_v45 = vsel %vm1296_vm2, %v2773_v9, %v3146_v62 }
  0xff   : > { %v645_v0 = vpop.permute.xlu1 %644  ;;  %2244 = vmatpush3.bf16.msra.mxu0 %v2241_v10  ;;  %2249 = vmatpush3.bf16.msra.mxu1 %v2241_v10 }
 0x100   : > { %v3339_v48 = vsel %vm1329_vm3, %v1320_v46, %v645_v0  ;;  %v643_v17 = vpop.permute.xlu0 %642  ;;  %2187 = vmatprep.subr.msk.mxu0 %vm1669_vm4, %v1564_v57  ;;  %2247 = vmatprep.subr.msk.mxu1 %vm1669_vm4, %v1564_v57 }
 0x101   : > { %v3342_v2 = vsel %vm1329_vm3, %v1319_v28, %v643_v17  ;;  %834 = vrot.lane.b32.xlu1 %v4482_v34, %s2417_s7 }
 0x102   : > { %1131 = vrot.lane.b32.xlu0 %v4482_v34, %s2420_s21  ;;  %v4484_v34 = vld [vmem:[#allocation64_spill] sm:$0xff] }
 0x103   : > { %v649_v13 = vpop.permute.xlu1 %648  ;;  %2188 = vmatpush3.msk.msra.mxu0 %vm1669_vm4, %v1564_v57  ;;  %2250 = vmatpush3.msk.msra.mxu1 %vm1669_vm4, %v1564_v57 }
 0x104   : > { %v3358_v61 = vsel %vm1329_vm3, %v1322_v49, %v649_v13  ;;  %v647_v38 = vpop.permute.xlu0 %646  ;;  %v4486_v49 = vld [vmem:[#allocation65_spill] sm:$0xff] }
 0x105   : > { %v3361_v11 = vsel %vm1329_vm3, %v1321_v15, %v647_v38  ;;  %1133 = vrot.lane.b32.xlu1 %v4483_v40, %s2420_s21  ;;  %v1327_v19 = vsel %vm1296_vm2, %v4487_v33, %v4486_v49 }
 0x106   : > { %1101 = vrot.lane.b32.xlu0 %v2566_v25, %s2420_s21  ;;  %v1326_v25 = vsel %vm1296_vm2, %v2795_v41, %v3154_v16  ;;  %v4485_v41 = vld [vmem:[#allocation26_spill] sm:$0xff] }
 0x107   : > { %v653_v31 = vpop.permute.xlu1 %652  ;;  %v1328_v16 = vsel %vm1296_vm2, %v4485_v41, %v4484_v34  ;;  %v4490_v41 = vld [vmem:[#allocation21_spill] sm:$0xff] }
 0x108   : > { %v3374_v37 = vsel %vm1329_vm3, %v1324_v45, %v653_v31  ;;  %v651_v10 = vpop.permute.xlu0 %650  ;;  %v4489_v31 = vld [vmem:[#allocation45_spill] sm:$0xff] }
 0x109   : > { %v3377_v46 = vsel %vm1329_vm3, %v1323_v36, %v651_v10  ;;  %1232 = vrot.lane.b32.xlu1 %v2985_v35, %s2421_s6 }
 0x10a   : > { %1200 = vrot.lane.b32.xlu0 %v2881_v14, %s2421_s6 }
 0x10b   : > { %v657_v62 = vpop.permute.xlu1 %656 }
 0x10c   : > { %v3390_v0 = vsel %vm1329_vm3, %v1326_v25, %v657_v62  ;;  %v655_v28 = vpop.permute.xlu0 %654 }
 0x10d   : > { %v3393_v17 = vsel %vm1329_vm3, %v1325_v3, %v655_v28  ;;  %903 = vrot.lane.b32.xlu1 %v2881_v14, %s2418_s8  ;;  %v4488_v14 = vld [vmem:[#allocation32_spill] sm:$0xff] }
 0x10e   : > { %836 = vrot.lane.b32.xlu0 %v4483_v40, %s2417_s7 }
 0x10f   : > { %v661_v57 = vpop.permute.xlu1 %660 }
 0x110   : > { %v3406_v13 = vsel %vm1329_vm3, %v1328_v16, %v661_v57  ;;  %v659_v15 = vpop.permute.xlu0 %658  ;;  %v4491_v16 = vld [vmem:[#allocation20_spill] sm:$0xff] }
 0x111   : > { %v3409_v38 = vsel %vm1329_vm3, %v1327_v19, %v659_v15  ;;  %1202 = vrot.lane.b32.xlu1 %v4488_v14, %s2421_s6  ;;  %v4495_v19 = vld [vmem:[#allocation47_spill] sm:$0xff] }
 0x112   : > { %935 = vrot.lane.b32.xlu0 %v2985_v35, %s2418_s8 }
 0x113   : > { %v3415_v40 = vpop.permute.xlu1 %698 }
 0x114   : > { %v3417_v45 = vpop.permute.xlu0 %696 }
 0x115   : > { %905 = vrot.lane.b32.xlu1 %v4488_v14, %s2418_s8 }
 0x116   : > { %1234 = vrot.lane.b32.xlu0 %v4489_v31, %s2421_s6 }
 0x117   : > { %v3423_v36 = vpop.permute.xlu1 %702 }
 0x118   : > { %v3425_v10 = vpop.permute.xlu0 %700 }
 0x119   : > { %1001 = vrot.lane.b32.xlu1 %v2560_v24, %s2419_s9 }
 0x11a   : > { %937 = vrot.lane.b32.xlu0 %v4489_v31, %s2418_s8 }
 0x11b   : > { %v707_v35 = vpop.permute.xlu1 %706 }
 0x11c   : > { %v3433_v25 = vsel %vm1362_vm5, %v3199_v42, %v707_v35  ;;  %v705_v62 = vpop.permute.xlu0 %704 }
 0x11d   : > { %v3437_v3 = vsel %vm1362_vm5, %v3202_v8, %v705_v62  ;;  %1003 = vrot.lane.b32.xlu1 %v2554_v22, %s2419_s9  ;;  %v4499_v62 = vld [vmem:[#allocation46_spill] sm:$0xff] }
 0x11e   : > { %1033 = vrot.lane.b32.xlu0 %v2735_v59, %s2419_s9 }
 0x11f   : > { %v711_v24 = vpop.permute.xlu1 %710 }
 0x120   : > { %v3445_v28 = vsel %vm1362_vm5, %v3215_v23, %v711_v24  ;;  %v709_v34 = vpop.permute.xlu0 %708  ;;  %v4500_v24 = vld [vmem:[#allocation33_spill] sm:$0xff] }
 0x121   : > { %v3449_v42 = vsel %vm1362_vm5, %v3218_v58, %v709_v34  ;;  %1103 = vrot.lane.b32.xlu1 %v4480_v27, %s2420_s21 }
 0x122   : > { %1035 = vrot.lane.b32.xlu0 %v2729_v53, %s2419_s9 }
 0x123   : > { %v715_v22 = vpop.permute.xlu1 %714 }
 0x124   : > { %v3457_v59 = vsel %vm1362_vm5, %v3231_v55, %v715_v22  ;;  %v713_v8 = vpop.permute.xlu0 %712 }
 0x125   : > { %v3461_v23 = vsel %vm1362_vm5, %v3234_v43, %v713_v8  ;;  %838 = vrot.lane.b32.xlu1 %v4490_v41, %s2417_s7  ;;  %v4492_v43 = vld [vmem:[#allocation5_spill] sm:$0xff] }
 0x126   : > { %1135 = vrot.lane.b32.xlu0 %v4490_v41, %s2420_s21 }
 0x127   : > { %v719_v58 = vpop.permute.xlu1 %718 }
 0x128   : > { %v3469_v53 = vsel %vm1362_vm5, %v3247_v44, %v719_v58  ;;  %v717_v27 = vpop.permute.xlu0 %716 }
 0x129   : > { %v3473_v55 = vsel %vm1362_vm5, %v3250_v63, %v717_v27  ;;  %1137 = vrot.lane.b32.xlu1 %v4491_v16, %s2420_s21  ;;  %v4496_v63 = vld [vmem:[#allocation34_spill] sm:$0xff] }
 0x12a   : > { %1105 = vrot.lane.b32.xlu0 %v4492_v43, %s2420_s21 }
 0x12b   : > { %v723_v57 = vpop.permute.xlu1 %722 }
 0x12c   : > { %v3481_v49 = vsel %vm1362_vm5, %v3263_v47, %v723_v57  ;;  %v721_v33 = vpop.permute.xlu0 %720 }
 0x12d   : > { %4493 = vst [vmem:[#allocation6_spill] sm:$0xff] %v3481_v49  ;;  %v3485_v44 = vsel %vm1362_vm5, %v3266_v21, %v721_v33  ;;  %1236 = vrot.lane.b32.xlu1 %v4495_v19, %s2421_s6  ;;  %v4501_v33 = vld [vmem:[#allocation23_spill] sm:$0xff] }
 0x12e   : > { %4494 = vst [vmem:[#allocation17_spill] sm:$0xff] %v3485_v44  ;;  %1204 = vrot.lane.b32.xlu0 %v4496_v63, %s2421_s6 }
 0x12f   : > { %v727_v15 = vpop.permute.xlu1 %726 }
 0x130   : > { %v3493_v14 = vsel %vm1362_vm5, %v3279_v1, %v727_v15  ;;  %v725_v31 = vpop.permute.xlu0 %724 }
 0x131   : > { %4497 = vst [vmem:[#allocation19_spill] sm:$0xff] %v3493_v14  ;;  %v3497_v47 = vsel %vm1362_vm5, %v3282_v6, %v725_v31  ;;  %840 = vrot.lane.b32.xlu1 %v4491_v16, %s2417_s7  ;;  %v4507_v31 = vld [vmem:[#allocation22_spill] sm:$0xff]  ;;  %v3642_v14 = vld [vmem:[%s2504_s30 + $0xc0] sm:$0xff] }
 0x132   : > { %4498 = vst [vmem:[#allocation18_spill] sm:$0xff] %v3497_v47  ;;  %808 = vrot.lane.b32.xlu0 %v4492_v43, %s2417_s7  ;;  %v4516_v47 = vld [vmem:[#allocation53_spill] sm:$0xff] }
 0x133   : > { %v3503_v21 = vpop.permute.xlu1 %730 }
 0x134   : > { %v3505_v35 = vpop.permute.xlu0 %728 }
 0x135   : > { %939 = vrot.lane.b32.xlu1 %v4495_v19, %s2418_s8 }
 0x136   : > { %907 = vrot.lane.b32.xlu0 %v4496_v63, %s2418_s8 }
 0x137   : > { %v3511_v1 = vpop.permute.xlu1 %734 }
 0x138   : > { %v3513_v6 = vpop.permute.xlu0 %732 }
 0x139   : > { %1238 = vrot.lane.b32.xlu1 %v4499_v62, %s2421_s6 }
 0x13a   : > { %1206 = vrot.lane.b32.xlu0 %v4500_v24, %s2421_s6 }
 0x13b   : > { %v739_v34 = vpop.permute.xlu1 %738 }
 0x13c   : > { %v3521_v22 = vsel %vm1362_vm5, %v3317_v52, %v739_v34  ;;  %v737_v8 = vpop.permute.xlu0 %736  ;;  %v4509_v34 = vld [vmem:[#allocation49_spill] sm:$0xff] }
 0x13d   : > { %v3525_v41 = vsel %vm1362_vm5, %v3320_v29, %v737_v8  ;;  %941 = vrot.lane.b32.xlu1 %v4499_v62, %s2418_s8 }
 0x13e   : > { %909 = vrot.lane.b32.xlu0 %v4500_v24, %s2418_s8 }
 0x13f   : > { %v743_v58 = vpop.permute.xlu1 %742 }
 0x140   : > { %v3533_v27 = vsel %vm1362_vm5, %v3339_v48, %v743_v58  ;;  %v741_v16 = vpop.permute.xlu0 %740 }
 0x141   : > { %v3537_v52 = vsel %vm1362_vm5, %v3342_v2, %v741_v16  ;;  %1037 = vrot.lane.b32.xlu1 %v2757_v20, %s2419_s9 }
 0x142   : > { %1005 = vrot.lane.b32.xlu0 %v2581_v32, %s2419_s9 }
 0x143   : > { %v747_v29 = vpop.permute.xlu1 %746 }
 0x144   : > { %v3545_v43 = vsel %vm1362_vm5, %v3358_v61, %v747_v29  ;;  %v745_v57 = vpop.permute.xlu0 %744 }
 0x145   : > { %v3549_v48 = vsel %vm1362_vm5, %v3361_v11, %v745_v57  ;;  %1039 = vrot.lane.b32.xlu1 %v2751_v26, %s2419_s9  ;;  %v4502_v11 = vld [vmem:[#allocation8_spill] sm:$0xff] }
 0x146   : > { %1007 = vrot.lane.b32.xlu0 %v2575_v30, %s2419_s9 }
 0x147   : > { %v751_v20 = vpop.permute.xlu1 %750 }
 0x148   : > { %v3557_v32 = vsel %vm1362_vm5, %v3374_v37, %v751_v20  ;;  %v749_v2 = vpop.permute.xlu0 %748  ;;  %v4511_v20 = vld [vmem:[#allocation48_spill] sm:$0xff] }
 0x149   : > { %v3561_v61 = vsel %vm1362_vm5, %v3377_v46, %v749_v2  ;;  %1139 = vrot.lane.b32.xlu1 %v4501_v33, %s2420_s21  ;;  %v4512_v2 = vld [vmem:[#allocation35_spill] sm:$0xff] }
 0x14a   : > { %1107 = vrot.lane.b32.xlu0 %v4502_v11, %s2420_s21 }
 0x14b   : > { %v755_v26 = vpop.permute.xlu1 %754 }
 0x14c   : > { %v3569_v30 = vsel %vm1362_vm5, %v3390_v0, %v755_v26  ;;  %v753_v19 = vpop.permute.xlu0 %752 }
 0x14d   : > { %4503 = vst [vmem:[#allocation64_spill] sm:$0xff] %v3569_v30  ;;  %v3573_v37 = vsel %vm1362_vm5, %v3393_v17, %v753_v19  ;;  %842 = vrot.lane.b32.xlu1 %v4501_v33, %s2417_s7  ;;  %v4508_v17 = vld [vmem:[#allocation7_spill] sm:$0xff] }
 0x14e   : > { %4504 = vst [vmem:[#allocation26_spill] sm:$0xff] %v3573_v37  ;;  %810 = vrot.lane.b32.xlu0 %v4502_v11, %s2417_s7  ;;  %v4517_v30 = vld [vmem:[#allocation67_spill] sm:$0xff] }
 0x14f   : > { %v759_v46 = vpop.permute.xlu1 %758 }
 0x150   : > { %v3581_v63 = vsel %vm1362_vm5, %v3406_v13, %v759_v46  ;;  %v757_v15 = vpop.permute.xlu0 %756  ;;  %v4510_v13 = vld [vmem:[#allocation36_spill] sm:$0xff] }
 0x151   : > { %4505 = vst [vmem:[#allocation65_spill] sm:$0xff] %v3581_v63  ;;  %v3585_v0 = vsel %vm1362_vm5, %v3409_v38, %v757_v15  ;;  %1141 = vrot.lane.b32.xlu1 %v4507_v31, %s2420_s21  ;;  %v2316_v46 = vld [vmem:[%s2504_s30 + $0x78] sm:$0xff]  ;;  %v4515_v63 = vld [vmem:[#allocation61_spill] sm:$0xff] }
 0x152   : > { %4506 = vst [vmem:[#allocation27_spill] sm:$0xff] %v3585_v0  ;;  %1109 = vrot.lane.b32.xlu0 %v4508_v17, %s2420_s21 }
 0x153   : > { %v3591_v62 = vpop.permute.xlu1 %800 }
 0x154   : > { %v799_v24 = vpop.permute.xlu0 %798 }
 0x155   : > { %1240 = vrot.lane.b32.xlu1 %v4509_v34, %s2421_s6 }
 0x156   : > { %1208 = vrot.lane.b32.xlu0 %v4510_v13, %s2421_s6 }
 0x157   : > { %v3597_v8 = vpop.permute.xlu1 %804 }
 0x158   : > { %v3599_v58 = vpop.permute.xlu0 %802 }
 0x159   : > { %844 = vrot.lane.b32.xlu1 %v4507_v31, %s2417_s7 }
 0x15a   : > { %812 = vrot.lane.b32.xlu0 %v4508_v17, %s2417_s7  ;;  %v2317_v17 = vld [vmem:[%s2504_s30 + $0x80] sm:$0xff] }
 0x15b   : > { %v831_v38 = vpop.permute.xlu1 %830 }
 0x15c   : > { %v3605_v16 = vpop.permute.xlu0 %806 }
 0x15d   : > { %943 = vrot.lane.b32.xlu1 %v4509_v34, %s2418_s8 }
 0x15e   : > { %911 = vrot.lane.b32.xlu0 %v4510_v13, %s2418_s8 }
 0x15f   : > { %v900_v29 = vpop.permute.xlu1 %899 }
 0x160   : > { %v3611_v57 = vpop.permute.xlu0 %832 }
 0x161   : > { %1242 = vrot.lane.b32.xlu1 %v4511_v20, %s2421_s6 }
 0x162   : > { %1210 = vrot.lane.b32.xlu0 %v4512_v2, %s2421_s6 }
 0x163   : > { %v3617_v33 = vpop.permute.xlu1 %901 }
 0x164   : > { %v932_v11 = vpop.permute.xlu0 %931 }
 0x165   : > { %945 = vrot.lane.b32.xlu1 %v4511_v20, %s2418_s8  ;;  %v4513_v20 = vld [vmem:[#allocation25_spill] sm:$0xff] }
 0x166   : > { %913 = vrot.lane.b32.xlu0 %v4512_v2, %s2418_s8 }
 0x167   : > { %v998_v26 = vpop.permute.xlu1 %997 }
 0x168   : > { %v3623_v19 = vpop.permute.xlu0 %933 }
 0x169   : > { %1041 = vrot.lane.b32.xlu1 %v2779_v60, %s2419_s9  ;;  %v4514_v60 = vld [vmem:[#allocation10_spill] sm:$0xff] }
 0x16a   : > { %1009 = vrot.lane.b32.xlu0 %v2316_v46, %s2419_s9 }
 0x16b   : > { %v1000_v15 = vpop.permute.xlu1 %999 }
 0x16c   : > { %v1030_v31 = vpop.permute.xlu0 %1029 }
 0x16d   : > { %1043 = vrot.lane.b32.xlu1 %v2773_v9, %s2419_s9  ;;  %v1313_v9 = vsel %vm1296_vm2, %v3642_v14, %v4515_v63 }
 0x16e   : > { %1011 = vrot.lane.b32.xlu0 %v2317_v17, %s2419_s9  ;;  %v2319_v17 = vld [vmem:[%s2504_s30] sm:$0xff]  ;;  %v1346_v49 = vsel %vm1329_vm3, %v1313_v9, %v3290_v54 }
 0x16f   : > { %v1100_v34 = vpop.permute.xlu1 %1099  ;;  %v1297_v0 = vsel %vm1296_vm2, %v2319_v17, %v4516_v47  ;;  %v1379_v63 = vsel %vm1362_vm5, %v1346_v49, %v3505_v35 }
 0x170   : > { %v3633_v13 = vpop.permute.xlu0 %1031  ;;  %v1330_v44 = vsel %vm1329_vm3, %v1297_v0, %v4517_v30  ;;  %v1412_v47 = vsel %vm1395_vm6, %v1379_v63, %v831_v38  ;;  %v4518_v30 = vld [vmem:[#allocation24_spill] sm:$0xff]  ;;  %v2320_v63 = vld [vmem:[%s2504_s30 + $0x8] sm:$0xff] }
 0x171   : > { %1143 = vrot.lane.b32.xlu1 %v4513_v20, %s2420_s21 }
 0x172   : > { %1111 = vrot.lane.b32.xlu0 %v4514_v60, %s2420_s21 }
 0x173   : > { %v3639_v2 = vpop.permute.xlu1 %834 }
 0x174   : > { %v1132_v46 = vpop.permute.xlu0 %1131 }
 0x175   : > { %846 = vrot.lane.b32.xlu1 %v4513_v20, %s2417_s7  ;;  %v1363_v20 = vsel %vm1362_vm5, %v1330_v44, %v3417_v45  ;;  %v4519_v45 = vld [vmem:[#allocation9_spill] sm:$0xff] }
 0x176   : > { %814 = vrot.lane.b32.xlu0 %v4514_v60, %s2417_s7  ;;  %v1396_v54 = vsel %vm1395_vm6, %v1363_v20, %v799_v24  ;;  %v1445_v60 = vsel %vm1428_vm7, %v1412_v47, %v932_v11  ;;  %v4520_v20 = vld [vmem:[#allocation57_spill] sm:$0xff] }
 0x177   : > { %v1134_v37 = vpop.permute.xlu1 %1133  ;;  %v1429_v49 = vsel %vm1428_vm7, %v1396_v54, %v900_v29  ;;  %v1478_v35 = vsel %vm1461_vm8, %v1445_v60, %v1030_v31  ;;  %v1298_v29 = vsel %vm1296_vm2, %v2320_v63, %v4520_v20  ;;  %v4521_v31 = vld [vmem:[#allocation52_spill] sm:$0xff] }
 0x178   : > { %v1102_v17 = vpop.permute.xlu0 %1101  ;;  %v1462_v44 = vsel %vm1461_vm8, %v1429_v49, %v998_v26  ;;  %v1511_v0 = vsel %vm1494_vm9, %v1478_v35, %v1132_v46  ;;  %v4522_v26 = vld [vmem:[#allocation66_spill] sm:$0xff] }
 0x179   : > { %1145 = vrot.lane.b32.xlu1 %v4518_v30, %s2420_s21  ;;  %v1495_v38 = vsel %vm1494_vm9, %v1462_v44, %v1100_v34  ;;  %v1331_v46 = vsel %vm1329_vm3, %v1298_v29, %v4522_v26  ;;  %v4523_v34 = vld [vmem:[#allocation38_spill] sm:$0xff]  ;;  %v2322_v26 = vld [vmem:[%s2504_s30 + $0x150] sm:$0xff] }
 0x17a   : > { %1113 = vrot.lane.b32.xlu0 %v4519_v45, %s2420_s21  ;;  %v1364_v54 = vsel %vm1362_vm5, %v1331_v46, %v3415_v40  ;;  %v4525_v29 = vld [vmem:[#allocation50_spill] sm:$0xff]  ;;  %v2323_v46 = vld [vmem:[%s2504_s30 + $0x90] sm:$0xff] }
 0x17b   : > { %v1233_v24 = vpop.permute.xlu1 %1232  ;;  %v1397_v49 = vsel %vm1395_vm6, %v1364_v54, %v3591_v62 }
 0x17c   : > { %v1201_v11 = vpop.permute.xlu0 %1200  ;;  %v1544_v9 = vsel %vm1527_vm10, %v1511_v0, %v1233_v24  ;;  %v1430_v44 = vsel %vm1428_vm7, %v1397_v49, %v3617_v33  ;;  %v3700_v0 = vld [vmem:[%s2504_s30 + $0xc8] sm:$0xff]  ;;  %v4524_v24 = vld [vmem:[#allocation60_spill] sm:$0xff] }
 0x17d   : > { %1244 = vrot.lane.b32.xlu1 %v4521_v31, %s2421_s6  ;;  %v1528_v47 = vsel %vm1527_vm10, %v1495_v38, %v1201_v11  ;;  %2213 = vmatprep.mubr.msk.f32.mxu1 %vm1572_vm11, %v1544_v9  ;;  %v1314_v38 = vsel %vm1296_vm2, %v3700_v0, %v4524_v24  ;;  %v1463_v40 = vsel %vm1461_vm8, %v1430_v44, %v1000_v15  ;;  %v2324_v49 = vld [vmem:[%s2504_s30 + $0x158] sm:$0xff] }
 0x17e   : > { %1212 = vrot.lane.b32.xlu0 %v4523_v34, %s2421_s6  ;;  %2189 = vmatprep.mubr.msk.f32.mxu0 %vm1572_vm11, %v1528_v47  ;;  %v1347_v62 = vsel %vm1329_vm3, %v1314_v38, %v3288_v51  ;;  %v1496_v11 = vsel %vm1494_vm9, %v1463_v40, %v1102_v17  ;;  %v2325_v44 = vld [vmem:[%s2504_s30 + $0x98] sm:$0xff] }
 0x17f   : > { %v3689_v60 = vpop.permute.xlu1 %903  ;;  %v3753_v40 = vld [vmem:[%s2504_s30 + $0xd8] sm:$0xff] }
 0x180   : > { %v3693_v35 = vpop.permute.xlu0 %836 }
 0x181   : > { %848 = vrot.lane.b32.xlu1 %v4518_v30, %s2417_s7  ;;  %v1380_v30 = vsel %vm1362_vm5, %v1347_v62, %v3503_v21  ;;  %v4527_v62 = vld [vmem:[#allocation63_spill] sm:$0xff] }
 0x182   : > { %816 = vrot.lane.b32.xlu0 %v4519_v45, %s2417_s7  ;;  %v1413_v20 = vsel %vm1395_vm6, %v1380_v30, %v3611_v57  ;;  %v2327_v30 = vld [vmem:[%s2504_s30 + $0x18] sm:$0xff] }
 0x183   : > { %v1203_v33 = vpop.permute.xlu1 %1202  ;;  %v1446_v51 = vsel %vm1428_vm7, %v1413_v20, %v3623_v19  ;;  %v4526_v19 = vld [vmem:[#allocation37_spill] sm:$0xff] }
 0x184   : > { %v1529_v9 = vsel %vm1527_vm10, %v1496_v11, %v1203_v33  ;;  %v936_v63 = vpop.permute.xlu0 %935  ;;  %v1479_v21 = vsel %vm1461_vm8, %v1446_v51, %v3633_v13  ;;  %v1315_v11 = vsel %vm1296_vm2, %v3753_v40, %v4527_v62  ;;  %v4528_v33 = vld [vmem:[#allocation29_spill] sm:$0xff] }
 0x185   : > { %947 = vrot.lane.b32.xlu1 %v4521_v31, %s2418_s8  ;;  %2190 = vmatmul.mubr.msk.f32.vlgmr.msra.gmra.mrb[0].mxu0 %vm1572_vm11, %v1529_v9  ;;  %v1512_v57 = vsel %vm1494_vm9, %v1479_v21, %v1134_v37  ;;  %v4529_v9 = vld [vmem:[#allocation51_spill] sm:$0xff]  ;;  %v1348_v51 = vsel %vm1329_vm3, %v1315_v11, %v3298_v39  ;;  %v4530_v21 = vld [vmem:[#allocation12_spill] sm:$0xff] }
 0x186   : > { %915 = vrot.lane.b32.xlu0 %v4523_v34, %s2418_s8  ;;  %v1299_v20 = vsel %vm1296_vm2, %v2327_v30, %v4529_v9  ;;  %v4534_v30 = vld [vmem:[#allocation62_spill] sm:$0xff] }
 0x187   : > { %v3725_v15 = vpop.permute.xlu1 %905 }
 0x188   : > { %v1235_v17 = vpop.permute.xlu0 %1234 }
 0x189   : > { %v1545_v45 = vsel %vm1527_vm10, %v1512_v57, %v1235_v17  ;;  %1246 = vrot.lane.b32.xlu1 %v4525_v29, %s2421_s6  ;;  %v4531_v57 = vld [vmem:[#allocation69_spill] sm:$0xff] }
 0x18a   : > { %1214 = vrot.lane.b32.xlu0 %v4526_v19, %s2421_s6  ;;  %2214 = vmatmul.mubr.msk.f32.vlgmr.msra.gmra.mrb[0].mxu1 %vm1572_vm11, %v1545_v45  ;;  %v1332_v17 = vsel %vm1329_vm3, %v1299_v20, %v4531_v57  ;;  %v1381_v45 = vsel %vm1362_vm5, %v1348_v51, %v3513_v6  ;;  %v4535_v20 = vld [vmem:[#allocation56_spill] sm:$0xff]  ;;  %v2329_v51 = vld [vmem:[%s2504_s30 + $0x20] sm:$0xff] }
 0x18b   : > { %v1002_v31 = vpop.permute.xlu1 %1001 }
 0x18c   : > { %v3734_v13 = vpop.permute.xlu0 %937 }
 0x18d   : > { %949 = vrot.lane.b32.xlu1 %v4525_v29, %s2418_s8 }
 0x18e   : > { %917 = vrot.lane.b32.xlu0 %v4526_v19, %s2418_s8  ;;  %v1365_v19 = vsel %vm1362_vm5, %v1332_v17, %v3425_v10 }
 0x18f   : > { %v3740_v37 = vpop.permute.xlu1 %1003  ;;  %v1398_v39 = vsel %vm1395_vm6, %v1365_v19, %v3599_v58  ;;  %v4538_v19 = vld [vmem:[#allocation68_spill] sm:$0xff] }
 0x190   : > { %v1034_v47 = vpop.permute.xlu0 %1033 }
 0x191   : > { %1045 = vrot.lane.b32.xlu1 %v2322_v26, %s2419_s9  ;;  %v1414_v26 = vsel %vm1395_vm6, %v1381_v45, %v3639_v2  ;;  %v4537_v45 = vld [vmem:[#allocation40_spill] sm:$0xff] }
 0x192   : > { %1013 = vrot.lane.b32.xlu0 %v2323_v46, %s2419_s9 }
 0x193   : > { %v1104_v34 = vpop.permute.xlu1 %1103 }
 0x194   : > { %v1036_v54 = vpop.permute.xlu0 %1035 }
 0x195   : > { %1047 = vrot.lane.b32.xlu1 %v2324_v49, %s2419_s9  ;;  %v1447_v49 = vsel %vm1428_vm7, %v1414_v26, %v936_v63 }
 0x196   : > { %1015 = vrot.lane.b32.xlu0 %v2325_v44, %s2419_s9  ;;  %v1431_v44 = vsel %vm1428_vm7, %v1398_v39, %v3689_v60  ;;  %v1480_v6 = vsel %vm1461_vm8, %v1447_v49, %v1034_v47  ;;  %v4532_v60 = vld [vmem:[#allocation28_spill] sm:$0xff]  ;;  %v4533_v47 = vld [vmem:[#allocation11_spill] sm:$0xff] }
 0x197   : > { %v3750_v24 = vpop.permute.xlu1 %838  ;;  %v1464_v10 = vsel %vm1461_vm8, %v1431_v44, %v1002_v31 }
 0x198   : > { %v1136_v38 = vpop.permute.xlu0 %1135  ;;  %v1497_v63 = vsel %vm1494_vm9, %v1464_v10, %v1104_v34  ;;  %v3801_v34 = vld [vmem:[%s2504_s30 + $0xe0] sm:$0xff] }
 0x199   : > { %1147 = vrot.lane.b32.xlu1 %v4528_v33, %s2420_s21  ;;  %v1513_v2 = vsel %vm1494_vm9, %v1480_v6, %v1136_v38  ;;  %v1316_v9 = vsel %vm1296_vm2, %v3801_v34, %v4534_v30  ;;  %v2330_v30 = vld [vmem:[%s2504_s30 + $0x168] sm:$0xff] }
 0x19a   : > { %1115 = vrot.lane.b32.xlu0 %v4530_v21, %s2420_s21  ;;  %v1349_v17 = vsel %vm1329_vm3, %v1316_v9, %v3296_v56  ;;  %v2331_v9 = vld [vmem:[%s2504_s30 + $0xa8] sm:$0xff] }
 0x19b   : > { %v1138_v29 = vpop.permute.xlu1 %1137  ;;  %v1382_v39 = vsel %vm1362_vm5, %v1349_v17, %v3511_v1 }
 0x19c   : > { %v1106_v46 = vpop.permute.xlu0 %1105  ;;  %v1415_v6 = vsel %vm1395_vm6, %v1382_v39, %v3693_v35 }
 0x19d   : > { %850 = vrot.lane.b32.xlu1 %v4528_v33, %s2417_s7 }
 0x19e   : > { %818 = vrot.lane.b32.xlu0 %v4530_v21, %s2417_s7  ;;  %v4536_v21 = vld [vmem:[#allocation55_spill] sm:$0xff] }
 0x19f   : > { %v1237_v58 = vpop.permute.xlu1 %1236  ;;  %v1300_v57 = vsel %vm1296_vm2, %v2329_v51, %v4536_v21  ;;  %v2332_v21 = vld [vmem:[%s2504_s30 + $0x170] sm:$0xff] }
 0x1a0   : > { %v1546_v62 = vsel %vm1527_vm10, %v1513_v2, %v1237_v58  ;;  %v1205_v11 = vpop.permute.xlu0 %1204  ;;  %v1333_v26 = vsel %vm1329_vm3, %v1300_v57, %v4538_v19  ;;  %v1448_v2 = vsel %vm1428_vm7, %v1415_v6, %v3734_v13  ;;  %v2333_v57 = vld [vmem:[%s2504_s30 + $0xb0] sm:$0xff] }
 0x1a1   : > { %v1530_v33 = vsel %vm1527_vm10, %v1497_v63, %v1205_v11  ;;  %1149 = vrot.lane.b32.xlu1 %v4532_v60, %s2420_s21  ;;  %2216 = vmatprep.mubr.msk.f32.mxu1 %vm1572_vm11, %v1546_v62  ;;  %v1366_v44 = vsel %vm1362_vm5, %v1333_v26, %v3423_v36  ;;  %v1481_v58 = vsel %vm1461_vm8, %v1448_v2, %v1036_v54  ;;  %v4539_v54 = vld [vmem:[#allocation54_spill] sm:$0xff]  ;;  %v4541_v19 = vld [vmem:[#allocation31_spill] sm:$0xff] }
 0x1a2   : > { %1117 = vrot.lane.b32.xlu0 %v4533_v47, %s2420_s21  ;;  %2192 = vmatprep.mubr.msk.f32.mxu0 %vm1572_vm11, %v1530_v33  ;;  %v1399_v56 = vsel %vm1395_vm6, %v1366_v44, %v3597_v8  ;;  %v1514_v35 = vsel %vm1494_vm9, %v1481_v58, %v1138_v29  ;;  %v4540_v29 = vld [vmem:[#allocation39_spill] sm:$0xff]  ;;  %v4542_v26 = vld [vmem:[#allocation14_spill] sm:$0xff]  ;;  %v1416_v44 = vsel %vm1395_vm6, %v3525_v41, %v3750_v24 }
 0x1a3   : > { %v3796_v31 = vpop.permute.xlu1 %840  ;;  %v1432_v1 = vsel %vm1428_vm7, %v1399_v56, %v3725_v15  ;;  %v1400_v56 = vsel %vm1395_vm6, %v3437_v3, %v3605_v16 }
 0x1a4   : > { %v3798_v38 = vpop.permute.xlu0 %808  ;;  %v1465_v36 = vsel %vm1461_vm8, %v1432_v1, %v3740_v37 }
 0x1a5   : > { %1248 = vrot.lane.b32.xlu1 %v4535_v20, %s2421_s6  ;;  %v1498_v63 = vsel %vm1494_vm9, %v1465_v36, %v1106_v46 }
 0x1a6   : > { %1216 = vrot.lane.b32.xlu0 %v4537_v45, %s2421_s6 }
 0x1a7   : > { %v940_v49 = vpop.permute.xlu1 %939 }
 0x1a8   : > { %v908_v10 = vpop.permute.xlu0 %907  ;;  %v1449_v2 = vsel %vm1428_vm7, %v1416_v44, %v940_v49 }
 0x1a9   : > { %852 = vrot.lane.b32.xlu1 %v4532_v60, %s2417_s7  ;;  %v1433_v1 = vsel %vm1428_vm7, %v1400_v56, %v908_v10  ;;  %v4544_v10 = vld [vmem:[#allocation13_spill] sm:$0xff]  ;;  %v793_v56 = vrot.slane %v3193_v5, 1 }
 0x1aa   : > { %820 = vrot.lane.b32.xlu0 %v4533_v47, %s2417_s7 }
 0x1ab   : > { %v1239_v8 = vpop.permute.xlu1 %1238 }
 0x1ac   : > { %v1547_v13 = vsel %vm1527_vm10, %v1514_v35, %v1239_v8  ;;  %v1207_v62 = vpop.permute.xlu0 %1206  ;;  %v4543_v8 = vld [vmem:[#allocation30_spill] sm:$0xff] }
 0x1ad   : > { %v1531_v11 = vsel %vm1527_vm10, %v1498_v63, %v1207_v62  ;;  %951 = vrot.lane.b32.xlu1 %v4535_v20, %s2418_s8  ;;  %2217 = vmatmul.mubr.msk.f32.gmra.mrb[2].mxu1 %vm1572_vm11, %v1547_v13  ;;  %v4545_v62 = vld [vmem:[#allocation59_spill] sm:$0xff] }
 0x1ae   : > { %919 = vrot.lane.b32.xlu0 %v4537_v45, %s2418_s8  ;;  %2193 = vmatmul.mubr.msk.f32.gmra.mrb[2].mxu0 %vm1572_vm11, %v1531_v11  ;;  %v4546_v11 = vld [vmem:[#allocation42_spill] sm:$0xff] }
 0x1af   : > { %v942_v15 = vpop.permute.xlu1 %941 }
 0x1b0   : > { %v910_v37 = vpop.permute.xlu0 %909 }
 0x1b1   : > { %1250 = vrot.lane.b32.xlu1 %v4539_v54, %s2421_s6 }
 0x1b2   : > { %1218 = vrot.lane.b32.xlu0 %v4540_v29, %s2421_s6 }
 0x1b3   : > { %v1038_v46 = vpop.permute.xlu1 %1037 }
 0x1b4   : > { %v1006_v33 = vpop.permute.xlu0 %1005  ;;  %v1482_v58 = vsel %vm1461_vm8, %v1449_v2, %v1038_v46 }
 0x1b5   : > { %953 = vrot.lane.b32.xlu1 %v4539_v54, %s2418_s8  ;;  %v1466_v36 = vsel %vm1461_vm8, %v1433_v1, %v1006_v33  ;;  %v1401_v33 = vsel %vm1395_vm6, %v3433_v25, %v3798_v38 }
 0x1b6   : > { %921 = vrot.lane.b32.xlu0 %v4540_v29, %s2418_s8  ;;  %v1417_v29 = vsel %vm1395_vm6, %v3521_v22, %v3796_v31 }
 0x1b7   : > { %v1040_v60 = vpop.permute.xlu1 %1039 }
 0x1b8   : > { %v1008_v47 = vpop.permute.xlu0 %1007 }
 0x1b9   : > { %1049 = vrot.lane.b32.xlu1 %v2330_v30, %s2419_s9  ;;  %v1450_v30 = vsel %vm1428_vm7, %v1417_v29, %v942_v15 }
 0x1ba   : > { %1017 = vrot.lane.b32.xlu0 %v2331_v9, %s2419_s9  ;;  %v1434_v9 = vsel %vm1428_vm7, %v1401_v33, %v910_v37 }
 0x1bb   : > { %v1140_v20 = vpop.permute.xlu1 %1139 }
 0x1bc   : > { %v1108_v51 = vpop.permute.xlu0 %1107  ;;  %v1515_v41 = vsel %vm1494_vm9, %v1482_v58, %v1140_v20  ;;  %v1483_v20 = vsel %vm1461_vm8, %v1450_v30, %v1040_v60 }
 0x1bd   : > { %1051 = vrot.lane.b32.xlu1 %v2332_v21, %s2419_s9  ;;  %v1499_v35 = vsel %vm1494_vm9, %v1466_v36, %v1108_v51  ;;  %v1467_v51 = vsel %vm1461_vm8, %v1434_v9, %v1008_v47  ;;  %v4547_v47 = vld [vmem:[#allocation58_spill] sm:$0xff] }
 0x1be   : > { %1019 = vrot.lane.b32.xlu0 %v2333_v57, %s2419_s9  ;;  %v4548_v57 = vld [vmem:[#allocation41_spill] sm:$0xff] }
 0x1bf   : > { %v3862_v17 = vpop.permute.xlu1 %842 }
 0x1c0   : > { %v3864_v45 = vpop.permute.xlu0 %810 }
 0x1c1   : > { %1151 = vrot.lane.b32.xlu1 %v4541_v19, %s2420_s21 }
 0x1c2   : > { %1119 = vrot.lane.b32.xlu0 %v4542_v26, %s2420_s21 }
 0x1c3   : > { %v1142_v39 = vpop.permute.xlu1 %1141 }
 0x1c4   : > { %v1110_v6 = vpop.permute.xlu0 %1109  ;;  %v1516_v22 = vsel %vm1494_vm9, %v1483_v20, %v1142_v39 }
 0x1c5   : > { %854 = vrot.lane.b32.xlu1 %v4541_v19, %s2417_s7  ;;  %v1500_v21 = vsel %vm1494_vm9, %v1467_v51, %v1110_v6  ;;  %v794_v6 = vrot.slane %v3187_v4, 1  ;;  %v4551_v51 = vld [vmem:[#allocation44_spill] sm:$0xff] }
 0x1c6   : > { %822 = vrot.lane.b32.xlu0 %v4542_v26, %s2417_s7 }
 0x1c7   : > { %v1241_v24 = vpop.permute.xlu1 %1240  ;;  %v795_v58 = vsel %vm340_vm0, %v793_v56, %v794_v6 }
 0x1c8   : > { %v1548_v3 = vsel %vm1527_vm10, %v1515_v41, %v1241_v24  ;;  %v1209_v16 = vpop.permute.xlu0 %1208  ;;  %v288_v41 = vld [vmem:[%s2504_s30 + $0x190] sm:$0x3] }
 0x1c9   : > { %v1532_v49 = vsel %vm1527_vm10, %v1499_v35, %v1209_v16  ;;  %1153 = vrot.lane.b32.xlu1 %v4543_v8, %s2420_s21  ;;  %2219 = vmatprep.mubr.msk.f32.mxu1 %vm1572_vm11, %v1548_v3  ;;  %v4549_v35 = vld [vmem:[#allocation16_spill] sm:$0xff]  ;;  %v1418_v16 = vsel %vm1395_vm6, %v3537_v52, %v3862_v17 }
 0x1ca   : > { %1121 = vrot.lane.b32.xlu0 %v4544_v10, %s2420_s21  ;;  %2195 = vmatprep.mubr.msk.f32.mxu0 %vm1572_vm11, %v1532_v49 }
 0x1cb   : > { %v3894_v63 = vpop.permute.xlu1 %844 }
 0x1cc   : > { %v3896_v13 = vpop.permute.xlu0 %812 }
 0x1cd   : > { %1252 = vrot.lane.b32.xlu1 %v4545_v62, %s2421_s6 }
 0x1ce   : > { %1220 = vrot.lane.b32.xlu0 %v4546_v11, %s2421_s6 }
 0x1cf   : > { %v944_v54 = vpop.permute.xlu1 %943 }
 0x1d0   : > { %v912_v46 = vpop.permute.xlu0 %911 }
 0x1d1   : > { %856 = vrot.lane.b32.xlu1 %v4543_v8, %s2417_s7  ;;  %v1402_v8 = vsel %vm1395_vm6, %v3449_v42, %v3864_v45 }
 0x1d2   : > { %824 = vrot.lane.b32.xlu0 %v4544_v10, %s2417_s7  ;;  %v1451_v10 = vsel %vm1428_vm7, %v1418_v16, %v944_v54 }
 0x1d3   : > { %v1243_v31 = vpop.permute.xlu1 %1242 }
 0x1d4   : > { %v1549_v25 = vsel %vm1527_vm10, %v1516_v22, %v1243_v31  ;;  %v1211_v38 = vpop.permute.xlu0 %1210  ;;  %v1419_v31 = vsel %vm1395_vm6, %v3533_v27, %v3894_v63 }
 0x1d5   : > { %v1533_v15 = vsel %vm1527_vm10, %v1500_v21, %v1211_v38  ;;  %955 = vrot.lane.b32.xlu1 %v4545_v62, %s2418_s8  ;;  %2220 = vmatmul.mubr.msk.f32.gmra.mrb[4].mxu1 %vm1572_vm11, %v1549_v25  ;;  %v894_v62 = vrot.slane %v3193_v5, 2  ;;  %v1403_v25 = vsel %vm1395_vm6, %v3445_v28, %v3896_v13 }
 0x1d6   : > { %923 = vrot.lane.b32.xlu0 %v4546_v11, %s2418_s8  ;;  %2196 = vmatmul.mubr.msk.f32.gmra.mrb[4].mxu0 %vm1572_vm11, %v1533_v15  ;;  %v1435_v11 = vsel %vm1428_vm7, %v1402_v8, %v912_v46  ;;  %v4550_v46 = vld [vmem:[#allocation15_spill] sm:$0xff] }
 0x1d7   : > { %v946_v37 = vpop.permute.xlu1 %945 }
 0x1d8   : > { %v914_v60 = vpop.permute.xlu0 %913  ;;  %v1452_v38 = vsel %vm1428_vm7, %v1419_v31, %v946_v37 }
 0x1d9   : > { %1254 = vrot.lane.b32.xlu1 %v4547_v47, %s2421_s6  ;;  %v1436_v15 = vsel %vm1428_vm7, %v1403_v25, %v914_v60 }
 0x1da   : > { %1222 = vrot.lane.b32.xlu0 %v4548_v57, %s2421_s6 }
 0x1db   : > { %v1042_v19 = vpop.permute.xlu1 %1041 }
 0x1dc   : > { %v1010_v26 = vpop.permute.xlu0 %1009  ;;  %v1484_v29 = vsel %vm1461_vm8, %v1451_v10, %v1042_v19 }
 0x1dd   : > { %957 = vrot.lane.b32.xlu1 %v4547_v47, %s2418_s8 }
 0x1de   : > { %925 = vrot.lane.b32.xlu0 %v4548_v57, %s2418_s8  ;;  %v897_v57 = vrot.slane %v288_v41, 2 }
 0x1df   : > { %v1044_v39 = vpop.permute.xlu1 %1043 }
 0x1e0   : > { %v1012_v44 = vpop.permute.xlu0 %1011  ;;  %v1485_v47 = vsel %vm1461_vm8, %v1452_v38, %v1044_v39 }
 0x1e1   : > { %1053 = vrot.lane.b32.xlu1 %v3193_v5, %s2419_s9  ;;  %v1469_v19 = vsel %vm1461_vm8, %v1436_v15, %v1012_v44 }
 0x1e2   : > { %1021 = vrot.lane.b32.xlu0 %v3642_v14, %s2419_s9  ;;  %v796_v14 = vrot.slane %v288_v41, 1  ;;  %v290_v41 = vld [vmem:[%s2504_s30 + $0x1a0] sm:$0xff] }
 0x1e3   : > { %v1144_v2 = vpop.permute.xlu1 %1143 }
 0x1e4   : > { %v1112_v1 = vpop.permute.xlu0 %1111  ;;  %v797_v52 = vsel %vm340_vm0, %v794_v6, %v796_v14  ;;  %v1517_v17 = vsel %vm1494_vm9, %v1484_v29, %v1144_v2  ;;  %v4552_v6 = vld [vmem:[#allocation43_spill] sm:$0xff] }
 0x1e5   : > { %1055 = vrot.lane.b32.xlu1 %v3187_v4, %s2419_s9 }
 0x1e6   : > { %1023 = vrot.lane.b32.xlu0 %v3700_v0, %s2419_s9  ;;  %v895_v0 = vrot.slane %v3187_v4, 2  ;;  %v1468_v4 = vsel %vm1461_vm8, %v1435_v11, %v1010_v26 }
 0x1e7   : > { %v3945_v36 = vpop.permute.xlu1 %846  ;;  %v1501_v45 = vsel %vm1494_vm9, %v1468_v4, %v1112_v1  ;;  %v289_v1 = vld [vmem:[%s2504_s30 + $0x198] sm:$0xff] }
 0x1e8   : > { %v3948_v24 = vpop.permute.xlu0 %814  ;;  %v896_v30 = vsel %vm517_vm1, %v894_v62, %v895_v0  ;;  %v898_v60 = vsel %vm517_vm1, %v895_v0, %v897_v57  ;;  %v1094_v14 = vrot.slane %v289_v1, 1  ;;  %v1195_v29 = vrot.slane %v289_v1, 2 }
 0x1e9   : > { %1155 = vrot.lane.b32.xlu1 %v795_v58, %s2420_s21 }
 0x1ea   : > { %1123 = vrot.lane.b32.xlu0 %v4549_v35, %s2420_s21 }
 0x1eb   : > { %v1146_v3 = vpop.permute.xlu1 %1145 }
 0x1ec   : > { %v1114_v49 = vpop.permute.xlu0 %1113  ;;  %v1518_v27 = vsel %vm1494_vm9, %v1485_v47, %v1146_v3  ;;  %v1095_v3 = vrot.slane %v290_v41, 1 }
 0x1ed   : > { %858 = vrot.lane.b32.xlu1 %v795_v58, %s2417_s7  ;;  %v1502_v26 = vsel %vm1494_vm9, %v1469_v19, %v1114_v49  ;;  %v291_v49 = vld [vmem:[%s2504_s30 + $0x1a8] sm:$0x3]  ;;  %s218_s30 = sand.u32 1, %s2396_s13  }
 0x1ee   : > { %826 = vrot.lane.b32.xlu0 %v4549_v35, %s2417_s7  ;;  %v1096_v8 = vsel %vm340_vm0, %v1094_v14, %v1095_v3  ;;  %v1097_v10 = vrot.slane %v291_v49, 1  ;;  %s4262_s15 = scalar_lea.sflag [#allocation3], %s218_s30 }
 0x1ef   : > { %v1245_v42 = vpop.permute.xlu1 %1244 }
 0x1f0   : > { %v1550_v54 = vsel %vm1527_vm10, %v1517_v17, %v1245_v42  ;;  %v1213_v33 = vpop.permute.xlu0 %1212  ;;  %v1404_v42 = vsel %vm1395_vm6, %v3461_v23, %v3948_v24 }
 0x1f1   : > { %v1534_v5 = vsel %vm1527_vm10, %v1501_v45, %v1213_v33  ;;  %1157 = vrot.lane.b32.xlu1 %v797_v52, %s2420_s21  ;;  %2222 = vmatprep.mubr.msk.f32.mxu1 %vm1572_vm11, %v1550_v54 }
 0x1f2   : > { %1125 = vrot.lane.b32.xlu0 %v4550_v46, %s2420_s21  ;;  %2198 = vmatprep.mubr.msk.f32.mxu0 %vm1572_vm11, %v1534_v5  ;;  %v1198_v5 = vrot.slane %v291_v49, 2 }
 0x1f3   : > { %v3979_v9 = vpop.permute.xlu1 %848 }
 0x1f4   : > { %v3981_v20 = vpop.permute.xlu0 %816  ;;  %v1421_v25 = vsel %vm1395_vm6, %v3545_v43, %v3979_v9 }
 0x1f5   : > { %1256 = vrot.lane.b32.xlu1 %v896_v30, %s2421_s6 }
 0x1f6   : > { %1224 = vrot.lane.b32.xlu0 %v4551_v51, %s2421_s6 }
 0x1f7   : > { %v948_v22 = vpop.permute.xlu1 %947 }
 0x1f8   : > { %v916_v21 = vpop.permute.xlu0 %915 }
 0x1f9   : > { %860 = vrot.lane.b32.xlu1 %v797_v52, %s2417_s7  ;;  %v1196_v52 = vrot.slane %v290_v41, 2  ;;  %v1437_v54 = vsel %vm1428_vm7, %v1404_v42, %v916_v21 }
 0x1fa   : > { %828 = vrot.lane.b32.xlu0 %v4550_v46, %s2417_s7 }
 0x1fb   : > { %v1247_v63 = vpop.permute.xlu1 %1246  ;;  %v1197_v33 = vsel %vm517_vm1, %v1195_v29, %v1196_v52 }
 0x1fc   : > { %v1551_v28 = vsel %vm1527_vm10, %v1518_v27, %v1247_v63  ;;  %v1215_v13 = vpop.permute.xlu0 %1214 }
 0x1fd   : > { %v1535_v37 = vsel %vm1527_vm10, %v1502_v26, %v1215_v13  ;;  %959 = vrot.lane.b32.xlu1 %v896_v30, %s2418_s8  ;;  %2223 = vmatmul.mubr.msk.f32.gmra.mrb[6].mxu1 %vm1572_vm11, %v1551_v28 }
 0x1fe   : > { %927 = vrot.lane.b32.xlu0 %v4551_v51, %s2418_s8  ;;  %2199 = vmatmul.mubr.msk.f32.gmra.mrb[6].mxu0 %vm1572_vm11, %v1535_v37 }
 0x1ff   : > { %v950_v39 = vpop.permute.xlu1 %949 }
 0x200   : > { %v918_v44 = vpop.permute.xlu0 %917  ;;  %v1454_v15 = vsel %vm1428_vm7, %v1421_v25, %v950_v39 }
 0x201   : > { %1258 = vrot.lane.b32.xlu1 %v898_v60, %s2421_s6 }
 0x202   : > { %1226 = vrot.lane.b32.xlu0 %v4552_v6, %s2421_s6 }
 0x203   : > { %v1046_v56 = vpop.permute.xlu1 %1045 }
 0x204   : > { %v1014_v2 = vpop.permute.xlu0 %1013 }
 0x205   : > { %961 = vrot.lane.b32.xlu1 %v898_v60, %s2418_s8 }
 0x206   : > { %929 = vrot.lane.b32.xlu0 %v4552_v6, %s2418_s8 }
 0x207   : > { %v1048_v58 = vpop.permute.xlu1 %1047 }
 0x208   : > { %v1016_v35 = vpop.permute.xlu0 %1015  ;;  %v1487_v57 = vsel %vm1461_vm8, %v1454_v15, %v1048_v58 }
 0x209   : > { %1057 = vrot.lane.b32.xlu1 %v289_v1, %s2419_s9 }
 0x20a   : > { %1025 = vrot.lane.b32.xlu0 %v3753_v40, %s2419_s9  ;;  %v1098_v40 = vsel %vm340_vm0, %v1095_v3, %v1097_v10 }
 0x20b   : > { %v1148_v16 = vpop.permute.xlu1 %1147 }
 0x20c   : > { %v1116_v0 = vpop.permute.xlu0 %1115 }
 0x20d   : > { %1059 = vrot.lane.b32.xlu1 %v290_v41, %s2419_s9 }
 0x20e   : > { %1027 = vrot.lane.b32.xlu0 %v3801_v34, %s2419_s9  ;;  %v1420_v34 = vsel %vm1395_vm6, %v3549_v48, %v3945_v36  ;;  %v1470_v48 = vsel %vm1461_vm8, %v1437_v54, %v1014_v2  ;;  %s2100_s9 = sshll.u32 %s218_s30, 8 }
 0x20f   : > { %v851_v62 = vpop.permute.xlu1 %850  ;;  %v1453_v45 = vsel %vm1428_vm7, %v1420_v34, %v948_v22  ;;  %v1503_v23 = vsel %vm1494_vm9, %v1470_v48, %v1116_v0  ;;  %s4121_s10 = scalar_lea.vmem [#allocation2], %s2100_s9 }
 0x210   : > { %v4025_v11 = vpop.permute.xlu0 %818  ;;  %v1422_v1 = vsel %vm1395_vm6, %v3561_v61, %v851_v62  ;;  %s1980_s18 = sshll.u32 %s4121_s10, 4  ;;  %s4255_s18 = int_to_ptr.vmem [resolvable:$true] %s1980_s18 }
 0x211   : > { %1159 = vrot.lane.b32.xlu1 %v1096_v8, %s2420_s21  ;;  %v1406_v41 = vsel %vm1395_vm6, %v3473_v55, %v4025_v11  ;;  %s2334_s26 = scalar_lea.vmem %s4255_s18, 4096  ;;  %p2341_p1 = scmp.lt.s32.totalorder %s4255_s18, %s2339_s28 }
 0x212   : > { %1127 = vrot.lane.b32.xlu0 %v2725_v50, %s2420_s21  ;;  %v1486_v50 = vsel %vm1461_vm8, %v1453_v45, %v1046_v56  ;;  %p2335_p12 = scmp.ne.s32.totalorder %s4255_s18, %s2334_s26  ;;  %p2342_p2 = scmp.lt.s32.totalorder %s2340_s29, %s2334_s26 }
 0x213   : > { %v1150_v4 = vpop.permute.xlu1 %1149  ;;  %v1519_v36 = vsel %vm1494_vm9, %v1486_v50, %v1148_v16 }
 0x214   : > { %v1118_v17 = vpop.permute.xlu0 %1117  ;;  %p2336_p13 = pnand %p2335_p12, %p2484_p4  ;;  %p2343_p3 = por %p2342_p2, %p2341_p1 }
 0x215   : > { %1161 = vrot.lane.b32.xlu1 %v1098_v40, %s2420_s21 }
 0x216   : > { %1129 = vrot.lane.b32.xlu0 %v4481_v12, %s2420_s21  ;;  %v1199_v12 = vsel %vm517_vm1, %v1196_v52, %v1198_v5  ;;  %p2337_p0 = pneg %p2336_p13 }
 0x217   : > { %v1249_v46 = vpop.permute.xlu1 %1248 }
 0x218   : > { %v1552_v24 = vsel %vm1527_vm10, %v1519_v36, %v1249_v46  ;;  %v1217_v30 = vpop.permute.xlu0 %1216  ;;  %p2344_p5 = pnand %p2343_p3, %p2337_p0 }
 0x219   : > { %v1536_v51 = vsel %vm1527_vm10, %v1503_v23, %v1217_v30  ;;  %1260 = vrot.lane.b32.xlu1 %v1197_v33, %s2421_s6  ;;  %2225 = vmatprep.mubr.msk.f32.mxu1 %vm1572_vm11, %v1552_v24  ;;  %v4115_v24 = vld [vmem:[%s4311_s2] ss:$0 sm:$0xff] }
 0x21a   : > { %1228 = vrot.lane.b32.xlu0 %v2972_v18, %s2421_s6  ;;  %2201 = vmatprep.mubr.msk.f32.mxu0 %vm1572_vm11, %v1536_v51  ;;  %v1405_v18 = vsel %vm1395_vm6, %v3457_v59, %v3981_v20 }
 0x21b   : > { %v853_v22 = vpop.permute.xlu1 %852  ;;  %v1438_v47 = vsel %vm1428_vm7, %v1405_v18, %v918_v44 }
 0x21c   : > { %v821_v31 = vpop.permute.xlu0 %820  ;;  %v1471_v19 = vsel %vm1461_vm8, %v1438_v47, %v1016_v35  ;;  %v1423_v52 = vsel %vm1395_vm6, %v3557_v32, %v853_v22 }
 0x21d   : > { %1262 = vrot.lane.b32.xlu1 %v1199_v12, %s2421_s6  ;;  %v1504_v63 = vsel %vm1494_vm9, %v1471_v19, %v1118_v17 }
 0x21e   : > { %1230 = vrot.lane.b32.xlu0 %v2967_v7, %s2421_s6  ;;  %v1520_v7 = vsel %vm1494_vm9, %v1487_v57, %v1150_v4  ;;  %v1407_v4 = vsel %vm1395_vm6, %v3469_v53, %v821_v31 }
 0x21f   : > { %v952_v21 = vpop.permute.xlu1 %951 }
 0x220   : > { %v920_v38 = vpop.permute.xlu0 %919  ;;  %v1455_v35 = vsel %vm1428_vm7, %v1422_v1, %v952_v21 }
 0x221   : > { %v1439_v14 = vsel %vm1428_vm7, %v1406_v41, %v920_v38 }
 0x223   : > { %v1251_v27 = vpop.permute.xlu1 %1250 }
 0x224   : > { %v1553_v43 = vsel %vm1527_vm10, %v1520_v7, %v1251_v27  ;;  %v1219_v9 = vpop.permute.xlu0 %1218 }
 0x225   : > { %v1537_v26 = vsel %vm1527_vm10, %v1504_v63, %v1219_v9  ;;  %2226 = vmatmul.mubr.msk.f32.gmra.mrb[8].mxu1 %vm1572_vm11, %v1553_v43 }
 0x226   : > { %2202 = vmatmul.mubr.msk.f32.gmra.mrb[8].mxu0 %vm1572_vm11, %v1537_v26 }
 0x227   : > { %v954_v59 = vpop.permute.xlu1 %953 }
 0x228   : > { %v922_v20 = vpop.permute.xlu0 %921  ;;  %v1456_v34 = vsel %vm1428_vm7, %v1423_v52, %v954_v59  ;;  %v4553_v59 = vld [vmem:[#allocation26_spill] sm:$0xff] }
 0x229   : > { %v1440_v17 = vsel %vm1428_vm7, %v1407_v4, %v922_v20 }
 0x22b   : > { %v1050_v28 = vpop.permute.xlu1 %1049 }
 0x22c   : > { %v1018_v13 = vpop.permute.xlu0 %1017  ;;  %v1488_v3 = vsel %vm1461_vm8, %v1455_v35, %v1050_v28 }
 0x22d   : > { %v1472_v16 = vsel %vm1461_vm8, %v1439_v14, %v1018_v13  ;;  %v4554_v13 = vld [vmem:[#allocation17_spill] sm:$0xff] }
 0x22f   : > { %v1052_v37 = vpop.permute.xlu1 %1051 }
 0x230   : > { %v1020_v60 = vpop.permute.xlu0 %1019  ;;  %v1489_v42 = vsel %vm1461_vm8, %v1456_v34, %v1052_v37 }
 0x231   : > { %v1473_v45 = vsel %vm1461_vm8, %v1440_v17, %v1020_v60 }
 0x233   : > { %v1152_v39 = vpop.permute.xlu1 %1151 }
 0x234   : > { %v1120_v44 = vpop.permute.xlu0 %1119  ;;  %v1521_v49 = vsel %vm1494_vm9, %v1488_v3, %v1152_v39 }
 0x235   : > { %v1505_v8 = vsel %vm1494_vm9, %v1472_v16, %v1120_v44 }
 0x237   : > { %v4074_v6 = vpop.permute.xlu1 %854 }
 0x238   : > { %v4076_v56 = vpop.permute.xlu0 %822  ;;  %v1424_v20 = vsel %vm1395_vm6, %v4553_v59, %v4074_v6 }
 0x239   : > { %v1408_v37 = vsel %vm1395_vm6, %v4554_v13, %v4076_v56 }
 0x23b   : > { %v1154_v2 = vpop.permute.xlu1 %1153 }
 0x23c   : > { %v1122_v58 = vpop.permute.xlu0 %1121  ;;  %v1522_v54 = vsel %vm1494_vm9, %v1489_v42, %v1154_v2 }
 0x23d   : > { %v1506_v33 = vsel %vm1494_vm9, %v1473_v45, %v1122_v58 }
 0x23f   : > { %v1253_v0 = vpop.permute.xlu1 %1252 }
 0x240   : > { %v1554_v61 = vsel %vm1527_vm10, %v1521_v49, %v1253_v0  ;;  %v1221_v10 = vpop.permute.xlu0 %1220  ;;  %v4555_v49 = vld [vmem:[#allocation64_spill] sm:$0xff] }
 0x241   : > { %v1538_v62 = vsel %vm1527_vm10, %v1505_v8, %v1221_v10  ;;  %2228 = vmatprep.mubr.msk.f32.mxu1 %vm1572_vm11, %v1554_v61  ;;  %v4556_v61 = vld [vmem:[#allocation6_spill] sm:$0xff] }
 0x242   : > { %2204 = vmatprep.mubr.msk.f32.mxu0 %vm1572_vm11, %v1538_v62 }
 0x243   : > { %v4093_v55 = vpop.permute.xlu1 %856 }
 0x244   : > { %v4095_v11 = vpop.permute.xlu0 %824  ;;  %v1425_v0 = vsel %vm1395_vm6, %v4555_v49, %v4093_v55 }
 0x245   : > { %v1409_v10 = vsel %vm1395_vm6, %v4556_v61, %v4095_v11 }
 0x247   : > { %v956_v29 = vpop.permute.xlu1 %955 }
 0x248   : > { %v924_v40 = vpop.permute.xlu0 %923  ;;  %v1457_v60 = vsel %vm1428_vm7, %v1424_v20, %v956_v29 }
 0x249   : > { %v1441_v39 = vsel %vm1428_vm7, %v1408_v37, %v924_v40  ;;  %v4559_v37 = vld [vmem:[#allocation65_spill] sm:$0xff] }
 0x24b   : > { %v1255_v50 = vpop.permute.xlu1 %1254 }
 0x24c   : > { %v1555_v32 = vsel %vm1527_vm10, %v1522_v54, %v1255_v50  ;;  %v1223_v5 = vpop.permute.xlu0 %1222 }
 0x24d   : > { %v1539_v53 = vsel %vm1527_vm10, %v1506_v33, %v1223_v5  ;;  %2229 = vmatmul.mubr.msk.f32.gmra.mrb[10].mxu1 %vm1572_vm11, %v1555_v32 }
 0x24e   : > { %2205 = vmatmul.mubr.msk.f32.gmra.mrb[10].mxu0 %vm1572_vm11, %v1539_v53 }
 0x24f   : > { %v958_v48 = vpop.permute.xlu1 %957 }
 0x250   : > { %v926_v36 = vpop.permute.xlu0 %925  ;;  %v1458_v62 = vsel %vm1428_vm7, %v1425_v0, %v958_v48 }
 0x251   : > { %v1442_v29 = vsel %vm1428_vm7, %v1409_v10, %v926_v36 }
 0x253   : > { %v1054_v46 = vpop.permute.xlu1 %1053 }
 0x254   : > { %v1022_v23 = vpop.permute.xlu0 %1021  ;;  %v1490_v44 = vsel %vm1461_vm8, %v1457_v60, %v1054_v46 }
 0x255   : > { %v1474_v2 = vsel %vm1461_vm8, %v1441_v39, %v1022_v23 }
 0x257   : > { %v1056_v30 = vpop.permute.xlu1 %1055 }
 0x258   : > { %v1024_v51 = vpop.permute.xlu0 %1023  ;;  %v2191_v12 = vpop.f32.mrb[0].mxu0  ;;  %v1491_v52 = vsel %vm1461_vm8, %v1458_v62, %v1056_v30 }
 0x259   : > { %v1745_v22 = vadd.f32 %v2191_v12, %v4115_v24  ;;  %v1739_v31 = vpop.f32.mrb[1].mxu0  ;;  %v1475_v40 = vsel %vm1461_vm8, %v1442_v29, %v1024_v51 }
 0x25a   : > { %v1740_v21 = vadd.f32 %v4115_v24, %v1739_v31 }
 0x25b   : > { %v1899_v25 = vmax.f32 %v1745_v22, 0.0  ;;  %v1156_v38 = vpop.permute.xlu1 %1155 }
 0x25c   : > { %v1898_v18 = vmax.f32 %v1740_v21, 0.0  ;;  %v1124_v15 = vpop.permute.xlu0 %1123  ;;  %v1523_v1 = vsel %vm1494_vm9, %v1490_v44, %v1156_v38 }
 0x25d   : > { %1931 = vst [vmem:[%s4121_s10 + $0x8] sm:$0xff] %v1899_v25  ;;  %v2215_v47 = vpop.f32.mrb[0].mxu1  ;;  %v1507_v41 = vsel %vm1494_vm9, %v1474_v2, %v1124_v15 }
 0x25e   : > { %1930 = vst [vmem:[%s4121_s10] sm:$0xff] %v1898_v18  ;;  %v1825_v57 = vadd.f32 %v2215_v47, %v4115_v24  ;;  %v1819_v19 = vpop.f32.mrb[1].mxu1  ;;  %v4557_v47 = vld [vmem:[#allocation27_spill] sm:$0xff] }
 0x25f   : > { %v1820_v7 = vadd.f32 %v4115_v24, %v1819_v19  ;;  %v4127_v27 = vpop.permute.xlu1 %858 }
 0x260   : > { %v1915_v63 = vmax.f32 %v1825_v57, 0.0  ;;  %v4129_v43 = vpop.permute.xlu0 %826  ;;  %v1426_v57 = vsel %vm1395_vm6, %v4557_v47, %v4127_v27 }
 0x261   : > { %v1914_v9 = vmax.f32 %v1820_v7, 0.0  ;;  %v4558_v7 = vld [vmem:[#allocation18_spill] sm:$0xff] }
 0x262   : > { %1947 = vst [vmem:[%s4121_s10 + $0x88] sm:$0xff] %v1915_v63  ;;  %v1410_v63 = vsel %vm1395_vm6, %v4558_v7, %v4129_v43  ;;  %v4560_v43 = vld [vmem:[#allocation19_spill] sm:$0xff] }
 0x263   : > { %1946 = vst [vmem:[%s4121_s10 + $0x80] sm:$0xff] %v1914_v9  ;;  %v1158_v26 = vpop.permute.xlu1 %1157 }
 0x264   : > { %v1126_v28 = vpop.permute.xlu0 %1125  ;;  %v1524_v4 = vsel %vm1494_vm9, %v1491_v52, %v1158_v26 }
 0x265   : > { %v1508_v17 = vsel %vm1494_vm9, %v1475_v40, %v1126_v28 }
 0x267   : > { %v1257_v58 = vpop.permute.xlu1 %1256 }
 0x268   : > { %v1556_v6 = vsel %vm1527_vm10, %v1523_v1, %v1257_v58  ;;  %v1225_v35 = vpop.permute.xlu0 %1224 }
 0x269   : > { %v1540_v14 = vsel %vm1527_vm10, %v1507_v41, %v1225_v35  ;;  %2231 = vmatprep.mubr.msk.f32.mxu1 %vm1572_vm11, %v1556_v6 }
 0x26a   : > { %2207 = vmatprep.mubr.msk.f32.mxu0 %vm1572_vm11, %v1540_v14 }
 0x26b   : > { %v861_v56 = vpop.permute.xlu1 %860 }
 0x26c   : > { %v829_v3 = vpop.permute.xlu0 %828  ;;  %v1427_v60 = vsel %vm1395_vm6, %v4559_v37, %v861_v56 }
 0x26d   : > { %v1411_v2 = vsel %vm1395_vm6, %v4560_v43, %v829_v3 }
 0x26f   : > { %v960_v16 = vpop.permute.xlu1 %959 }
 0x270   : > { %v928_v8 = vpop.permute.xlu0 %927  ;;  %v1459_v9 = vsel %vm1428_vm7, %v1426_v57, %v960_v16 }
 0x271   : > { %v1443_v26 = vsel %vm1428_vm7, %v1410_v63, %v928_v8 }
 0x273   : > { %v1259_v34 = vpop.permute.xlu1 %1258 }
 0x274   : > { %v1557_v55 = vsel %vm1527_vm10, %v1524_v4, %v1259_v34  ;;  %v1227_v42 = vpop.permute.xlu0 %1226 }
 0x275   : > { %v1541_v45 = vsel %vm1527_vm10, %v1508_v17, %v1227_v42  ;;  %2232 = vmatmul.mubr.msk.f32.gmra.mrb[12].mxu1 %vm1572_vm11, %v1557_v55 }
 0x276   : > { %2208 = vmatmul.mubr.msk.f32.gmra.mrb[12].mxu0 %vm1572_vm11, %v1541_v45 }
 0x277   : > { %v962_v11 = vpop.permute.xlu1 %961 }
 0x278   : > { %v930_v54 = vpop.permute.xlu0 %929  ;;  %v1460_v1 = vsel %vm1428_vm7, %v1427_v60, %v962_v11 }
 0x279   : > { %v1444_v41 = vsel %vm1428_vm7, %v1411_v2, %v930_v54 }
 0x27b   : > { %v1058_v50 = vpop.permute.xlu1 %1057 }
 0x27c   : > { %v1026_v33 = vpop.permute.xlu0 %1025  ;;  %v1492_v59 = vsel %vm1461_vm8, %v1459_v9, %v1058_v50 }
 0x27d   : > { %v1476_v20 = vsel %vm1461_vm8, %v1443_v26, %v1026_v33 }
 0x27f   : > { %v1060_v32 = vpop.permute.xlu1 %1059 }
 0x280   : > { %v1028_v5 = vpop.permute.xlu0 %1027  ;;  %v2218_v53 = vpop.f32.mrb[2].mxu1  ;;  %v1493_v6 = vsel %vm1461_vm8, %v1460_v1, %v1060_v32 }
 0x281   : > { %v2194_v48 = vpop.f32.mrb[2].mxu0  ;;  %v1835_v36 = vadd.f32 %v2218_v53, %v4115_v24  ;;  %v1829_v46 = vpop.f32.mrb[3].mxu1  ;;  %v1477_v35 = vsel %vm1461_vm8, %v1444_v41, %v1028_v5 }
 0x282   : > { %v1755_v23 = vadd.f32 %v2194_v48, %v4115_v24  ;;  %v1749_v30 = vpop.f32.mrb[3].mxu0  ;;  %v1830_v51 = vadd.f32 %v4115_v24, %v1829_v46 }
 0x283   : > { %v1917_v12 = vmax.f32 %v1835_v36, 0.0  ;;  %v1750_v22 = vadd.f32 %v4115_v24, %v1749_v30  ;;  %v1160_v31 = vpop.permute.xlu1 %1159 }
 0x284   : > { %v1901_v21 = vmax.f32 %v1755_v23, 0.0  ;;  %v1916_v25 = vmax.f32 %v1830_v51, 0.0  ;;  %v1128_v38 = vpop.permute.xlu0 %1127  ;;  %v1525_v28 = vsel %vm1494_vm9, %v1492_v59, %v1160_v31 }
 0x285   : > { %1949 = vst [vmem:[%s4121_s10 + $0x98] sm:$0xff] %v1917_v12  ;;  %v1900_v18 = vmax.f32 %v1750_v22, 0.0  ;;  %v1509_v27 = vsel %vm1494_vm9, %v1476_v20, %v1128_v38 }
 0x286   : > { %1933 = vst [vmem:[%s4121_s10 + $0x18] sm:$0xff] %v1901_v21  ;;  %1948 = vst [vmem:[%s4121_s10 + $0x90] sm:$0xff] %v1916_v25 }
 0x287   : > { %1932 = vst [vmem:[%s4121_s10 + $0x10] sm:$0xff] %v1900_v18  ;;  %v1162_v15 = vpop.permute.xlu1 %1161 }
 0x288   : > { %v1130_v19 = vpop.permute.xlu0 %1129  ;;  %v1526_v14 = vsel %vm1494_vm9, %v1493_v6, %v1162_v15 }
 0x289   : > { %v1510_v16 = vsel %vm1494_vm9, %v1477_v35, %v1130_v19 }
 0x28b   : > { %v1261_v13 = vpop.permute.xlu1 %1260 }
 0x28c   : > { %v1558_v39 = vsel %vm1527_vm10, %v1525_v28, %v1261_v13  ;;  %v1229_v44 = vpop.permute.xlu0 %1228 }
 0x28d   : > { %v1542_v58 = vsel %vm1527_vm10, %v1509_v27, %v1229_v44  ;;  %2234 = vmatprep.mubr.msk.f32.mxu1 %vm1572_vm11, %v1558_v39 }
 0x28e   : > { %2210 = vmatprep.mubr.msk.f32.mxu0 %vm1572_vm11, %v1542_v58 }
 0x28f   : > { %v1263_v56 = vpop.permute.xlu1 %1262 }
 0x290   : > { %v1559_v3 = vsel %vm1527_vm10, %v1526_v14, %v1263_v56  ;;  %v1231_v49 = vpop.permute.xlu0 %1230 }
 0x291   : > { %v1543_v0 = vsel %vm1527_vm10, %v1510_v16, %v1231_v49  ;;  %2235 = vmatmul.mubr.msk.f32.gmra.mrb[14].mxu1 %vm1572_vm11, %v1559_v3 }
 0x292   : > { %2211 = vmatmul.mubr.msk.f32.gmra.mrb[14].mxu0 %vm1572_vm11, %v1543_v0 }
 0x2a8   : > { %v2221_v8 = vpop.f32.mrb[4].mxu1 }
 0x2a9   : > { %v2197_v61 = vpop.f32.mrb[4].mxu0  ;;  %v1845_v10 = vadd.f32 %v2221_v8, %v4115_v24  ;;  %v1839_v62 = vpop.f32.mrb[5].mxu1 }
 0x2aa   : > { %v1765_v29 = vadd.f32 %v2197_v61, %v4115_v24  ;;  %v1759_v52 = vpop.f32.mrb[5].mxu0  ;;  %v1840_v40 = vadd.f32 %v4115_v24, %v1839_v62 }
 0x2ab   : > { %v1919_v4 = vmax.f32 %v1845_v10, 0.0  ;;  %v1760_v34 = vadd.f32 %v4115_v24, %v1759_v52 }
 0x2ac   : > { %v1903_v17 = vmax.f32 %v1765_v29, 0.0  ;;  %v1918_v55 = vmax.f32 %v1840_v40, 0.0 }
 0x2ad   : > { %1951 = vst [vmem:[%s4121_s10 + $0xa8] sm:$0xff] %v1919_v4  ;;  %v1902_v42 = vmax.f32 %v1760_v34, 0.0 }
 0x2ae   : > { %1935 = vst [vmem:[%s4121_s10 + $0x28] sm:$0xff] %v1903_v17  ;;  %1950 = vst [vmem:[%s4121_s10 + $0xa0] sm:$0xff] %v1918_v55 }
 0x2af   : > { %1934 = vst [vmem:[%s4121_s10 + $0x20] sm:$0xff] %v1902_v42 }
 0x2d0   : > { %v2224_v45 = vpop.f32.mrb[6].mxu1 }
 0x2d1   : > { %v2200_v11 = vpop.f32.mrb[6].mxu0  ;;  %v1855_v54 = vadd.f32 %v2224_v45, %v4115_v24  ;;  %v1849_v50 = vpop.f32.mrb[7].mxu1 }
 0x2d2   : > { %v1775_v33 = vadd.f32 %v2200_v11, %v4115_v24  ;;  %v1769_v32 = vpop.f32.mrb[7].mxu0  ;;  %v1850_v5 = vadd.f32 %v4115_v24, %v1849_v50 }
 0x2d3   : > { %v1921_v53 = vmax.f32 %v1855_v54, 0.0  ;;  %v1770_v48 = vadd.f32 %v4115_v24, %v1769_v32 }
 0x2d4   : > { %v1905_v36 = vmax.f32 %v1775_v33, 0.0  ;;  %v1920_v46 = vmax.f32 %v1850_v5, 0.0 }
 0x2d5   : > { %1953 = vst [vmem:[%s4121_s10 + $0xb8] sm:$0xff] %v1921_v53  ;;  %v1904_v23 = vmax.f32 %v1770_v48, 0.0 }
 0x2d6   : > { %1937 = vst [vmem:[%s4121_s10 + $0x38] sm:$0xff] %v1905_v36  ;;  %1952 = vst [vmem:[%s4121_s10 + $0xb0] sm:$0xff] %v1920_v46 }
 0x2d7   : > { %1936 = vst [vmem:[%s4121_s10 + $0x30] sm:$0xff] %v1904_v23 }
 0x2f8   : > { %v2227_v30 = vpop.f32.mrb[8].mxu1 }
 0x2f9   : > { %v2203_v51 = vpop.f32.mrb[8].mxu0  ;;  %v1865_v12 = vadd.f32 %v2227_v30, %v4115_v24  ;;  %v1859_v22 = vpop.f32.mrb[9].mxu1 }
 0x2fa   : > { %v1785_v31 = vadd.f32 %v2203_v51, %v4115_v24  ;;  %v1779_v21 = vpop.f32.mrb[9].mxu0  ;;  %v1860_v25 = vadd.f32 %v4115_v24, %v1859_v22 }
 0x2fb   : > { %v1923_v38 = vmax.f32 %v1865_v12, 0.0  ;;  %v1780_v18 = vadd.f32 %v4115_v24, %v1779_v21 }
 0x2fc   : > { %v1907_v15 = vmax.f32 %v1785_v31, 0.0  ;;  %v1922_v47 = vmax.f32 %v1860_v25, 0.0 }
 0x2fd   : > { %1955 = vst [vmem:[%s4121_s10 + $0xc8] sm:$0xff] %v1923_v38  ;;  %v1906_v57 = vmax.f32 %v1780_v18, 0.0 }
 0x2fe   : > { %1939 = vst [vmem:[%s4121_s10 + $0x48] sm:$0xff] %v1907_v15  ;;  %1954 = vst [vmem:[%s4121_s10 + $0xc0] sm:$0xff] %v1922_v47 }
 0x2ff   : > { %1938 = vst [vmem:[%s4121_s10 + $0x40] sm:$0xff] %v1906_v57 }
 0x320   : > { %v2230_v19 = vpop.f32.mrb[10].mxu1 }
 0x321   : > { %v2206_v7 = vpop.f32.mrb[10].mxu0  ;;  %v1875_v63 = vadd.f32 %v2230_v19, %v4115_v24  ;;  %v1869_v9 = vpop.f32.mrb[11].mxu1 }
 0x322   : > { %v1795_v26 = vadd.f32 %v2206_v7, %v4115_v24  ;;  %v1789_v59 = vpop.f32.mrb[11].mxu0  ;;  %v1870_v20 = vadd.f32 %v4115_v24, %v1869_v9 }
 0x323   : > { %v1925_v28 = vmax.f32 %v1875_v63, 0.0  ;;  %v1790_v13 = vadd.f32 %v4115_v24, %v1789_v59 }
 0x324   : > { %v1909_v37 = vmax.f32 %v1795_v26, 0.0  ;;  %v1924_v60 = vmax.f32 %v1870_v20, 0.0 }
 0x325   : > { %1957 = vst [vmem:[%s4121_s10 + $0xd8] sm:$0xff] %v1925_v28  ;;  %v1908_v27 = vmax.f32 %v1790_v13, 0.0 }
 0x326   : > { %1941 = vst [vmem:[%s4121_s10 + $0x58] sm:$0xff] %v1909_v37  ;;  %1956 = vst [vmem:[%s4121_s10 + $0xd0] sm:$0xff] %v1924_v60 }
 0x327   : > { %1940 = vst [vmem:[%s4121_s10 + $0x50] sm:$0xff] %v1908_v27 }
 0x348   : > { %v2233_v39 = vpop.f32.mrb[12].mxu1 }
 0x349   : > { %v2209_v44 = vpop.f32.mrb[12].mxu0  ;;  %v1885_v43 = vadd.f32 %v2233_v39, %v4115_v24  ;;  %v1879_v2 = vpop.f32.mrb[13].mxu1 }
 0x34a   : > { %v1805_v1 = vadd.f32 %v2209_v44, %v4115_v24  ;;  %v1799_v58 = vpop.f32.mrb[13].mxu0  ;;  %v1880_v41 = vadd.f32 %v4115_v24, %v1879_v2 }
 0x34b   : > { %v1927_v6 = vmax.f32 %v1885_v43, 0.0  ;;  %v1800_v35 = vadd.f32 %v4115_v24, %v1799_v58 }
 0x34c   : > { %v1911_v14 = vmax.f32 %v1805_v1, 0.0  ;;  %v1926_v56 = vmax.f32 %v1880_v41, 0.0 }
 0x34d   : > { %1959 = vst [vmem:[%s4121_s10 + $0xe8] sm:$0xff] %v1927_v6  ;;  %v1910_v16 = vmax.f32 %v1800_v35, 0.0 }
 0x34e   : > { %1943 = vst [vmem:[%s4121_s10 + $0x68] sm:$0xff] %v1911_v14  ;;  %1958 = vst [vmem:[%s4121_s10 + $0xe0] sm:$0xff] %v1926_v56 }
 0x34f   : > { %1942 = vst [vmem:[%s4121_s10 + $0x60] sm:$0xff] %v1910_v16 }
 0x364   : > { %v2236_v3 = vpop.f32.mrb[14].mxu1 }
 0x365   : > { %v2212_v49 = vpop.f32.mrb[14].mxu0  ;;  %v1895_v0 = vadd.f32 %v2236_v3, %v4115_v24  ;;  %v1889_v8 = vpop.f32.mrb[15].mxu1 }
 0x366   : > { %v1815_v61 = vadd.f32 %v2212_v49, %v4115_v24  ;;  %v1809_v10 = vpop.f32.mrb[15].mxu0  ;;  %v1890_v62 = vadd.f32 %v4115_v24, %v1889_v8 }
 0x367   : > { %v1929_v29 = vmax.f32 %v1895_v0, 0.0  ;;  %v1810_v52 = vadd.f32 %v4115_v24, %v1809_v10 }
 0x368   : > { %v1913_v40 = vmax.f32 %v1815_v61, 0.0  ;;  %v1928_v4 = vmax.f32 %v1890_v62, 0.0 }
 0x369   : > { %1961 = vst [vmem:[%s4121_s10 + $0xf8] sm:$0xff] %v1929_v29  ;;  %v1912_v34 = vmax.f32 %v1810_v52, 0.0 }
 0x36a   : > { %1945 = vst [vmem:[%s4121_s10 + $0x78] sm:$0xff] %v1913_v40  ;;  %1960 = vst [vmem:[%s4121_s10 + $0xf0] sm:$0xff] %v1928_v4 }
 0x36b   : > { %1944 = vst [vmem:[%s4121_s10 + $0x70] sm:$0xff] %v1912_v34 }
 0x36c   : > { %2347 = shalt.err (!%p2344_p5)
}
 0x36d   : > { %s2348_s4 = scalar_lea.hbm %s4252_s23, 4096  ;;  %s2352_s7 = scalar_lea.hbm %s4312_s3, 8192 }
 0x36e   : > { %p2349_p6 = scmp.ne.s32.totalorder %s4252_s23, %s2348_s4  ;;  %p2353_p10 = scmp.lt.u32.totalorder %s4252_s23, %s4312_s3 }
 0x36f   : > { %p2354_p11 = scmp.lt.u32.totalorder %s2352_s7, %s2348_s4  ;;  %p2356_p13 = scmp.lt.u32.totalorder %s2348_s4, %s4252_s23 }
 0x370   : > { %p2350_p7 = pnand %p2349_p6, %p2484_p4 }
 0x371   : > { %p2355_p12 = por %p2354_p11, %p2353_p10 }
 0x372   : > { %p2351_p9 = pneg %p2350_p7 }
 0x373   : > { %p2357_p0 = por %p2356_p13, %p2355_p12 }
 0x375   : > { %p2358_p1 = pnand %p2357_p0, %p2351_p9 }
 0x377   : > { %2361 = shalt.err (!%p2358_p1)
}
 0x378   : > { %s2423_s10 = smov 128  }
 0x379   : > { %2252 = dma.vmem_to_hbm [thread:$0]  (%p2484_p4), %s4255_s18, 4096, %s4252_s23, %s4262_s15, %s2423_s10, %s2423_s10, %s2415_s5  }
 0x37a PF: > { %p2258_p2 = scmp.ge.s32.totalorder %s2412_s17, 2  ;;  %s1995_s11 = sand.u32 1, %s2392_s12  }
 0x37b   : > { %s1996_s19 = scalar_lea.sflag [#allocation3], %s1995_s11 }
 0x37c   : > { %p2255_p3 = pnand %p2258_p2, %p2491_p8 }
 0x37e   : > { %2387 = dma.done.wait (!%p2255_p3), %s1996_s19, 4096  }
 0x37f   : > { %2389 = vsyncadd (!%p2255_p3), %s1996_s19, 4294963200  ;;  %s16_s17 = sadd.s32 1, %s2412_s17   ;;  %s4561_s12 = smov %s2396_s13 }
 0x380   : > { %p13_p5 = scmp.ge.s32.totalorder %s16_s17, 4   ;;  %s4562_s13 = smov %s2400_s14 }
 0x381   : > { %s4563_s14 = smov %s2497_s25  ;;  %s4564_s15 = smov %s2408_s16 }
 0x382   : > { %s4565_s16 = smov %s4567_s20  ;;  %15 = sbr.rel (!%p13_p5) target bundleno = 4 (0x4), region = 73 }
 0x389   :  { %2001 = vsyncpa [#allocation3], 1 }
 0x38a   :  { %2003 = vsyncpa [#allocation3 + $0x1], 1 }

</bundles_post_ra>
